<compile_context>
chip_gen: v5e
topology: v5e:2x2
jax: 0.10.0
libtpu: 0.0.40
codegen_flags: <defaults>
</compile_context>

<pallas_src>
import math

import jax
import jax.numpy as jnp
from jax import lax
from jax.experimental import pallas as pl
from jax.experimental.pallas import tpu as pltpu


_INV_SQRT2 = 1.0 / math.sqrt(2.0)


def _mlm_head_kernel(eps):
    def kernel(x_ref, w1_ref, b1_ref, g_ref, beta_ref, w2_ref, b2_ref,
               o_ref, t_ref):
        # --- prediction-head transform, computed once per M-tile ------------
        @pl.when(pl.program_id(1) == 0)
        def _():
            x = x_ref[...].astype(w1_ref.dtype)        # bf16 MXU inputs
            h = jnp.dot(x, w1_ref[...], preferred_element_type=jnp.float32)
            h = h + b1_ref[...]
            # exact-erf GELU (matches the PyTorch reference, not tanh approx).
            # TODO(synk): optional tanh-approx GELU flag for v5e if the j==0
            # step ever shows up as an exposed VPU bubble in profiles.
            h = h * 0.5 * (1.0 + lax.erf(h * _INV_SQRT2))
            # LayerNorm over the hidden (last) dimension, f32
            mean = jnp.mean(h, axis=-1, keepdims=True)
            c = h - mean
            var = jnp.mean(c * c, axis=-1, keepdims=True)
            h = c * lax.rsqrt(var + eps)
            h = h * g_ref[...] + beta_ref[...]
            # cache in decoder compute dtype (bf16) for the vocab loop
            t_ref[...] = h.astype(t_ref.dtype)

        # --- decoder: (tile_m, H) @ (H, tile_v) on the MXU, f32 accumulate --
        logits = jnp.dot(t_ref[...], w2_ref[...],
                         preferred_element_type=jnp.float32)
        o_ref[...] = (logits + b2_ref[...]).astype(o_ref.dtype)

    return kernel


def _round_up(x, m):
    return ((x + m - 1) // m) * m


def _vmem_capacity_bytes():
    try:
        return int(pltpu.get_tpu_info().vmem_capacity_bytes)
    except Exception:
        return 64 << 20   # conservative (v7x-sized) fallback


def bert_only_mlm_head(sequence_output, params, *, eps=1e-12,
                       tile_m=None, tile_v=1024,
                       decoder_dtype=jnp.bfloat16, out_dtype=None):
    """sequence_output: [B, S, H] -> prediction_scores [B, S, V]."""
    B, S, H = sequence_output.shape
    W1, b1, gamma, beta, W2, b2 = (
        params["dense_w"], params["dense_b"],
        params["ln_gamma"], params["ln_beta"],
        params["decoder_w"], params["decoder_b"],
    )
    V = W2.shape[1]
    M = B * S
    out_dtype = sequence_output.dtype if out_dtype is None else out_dtype

    cap = _vmem_capacity_bytes()

    dec_bytes = jnp.dtype(decoder_dtype).itemsize
    out_bytes = jnp.dtype(out_dtype).itemsize
    x_bytes = jnp.dtype(sequence_output.dtype).itemsize

    # --- vocab tiling (lane axis): 128-aligned, pad V up to n_v * tile_v ----
    tile_v = min(tile_v, _round_up(V, 128))
    n_v = -(-V // tile_v)
    tile_v = _round_up(-(-V // n_v), 128)
    Vp = n_v * tile_v

    # --- M tiling (sublane axis): 16-aligned for bf16 packing --------------
    # Generation-aware default (W2 is re-streamed M/tile_m times):
    #   128 MiB VMEM (v5e/v6e) -> 768;  64 MiB (v7x) -> 512.
    if tile_m is None:
        tile_m = 768 if cap >= (96 << 20) else 512

    def vmem_est(tm, const_bufs=2):
        return (2 * (tm * H * x_bytes                    # x (double buffered)
                     + H * tile_v * dec_bytes            # W2 (bf16)
                     + tile_v * 4                        # decoder bias
                     + tm * tile_v * out_bytes)          # output tile
                + const_bufs * (H * H * dec_bytes        # W1 (bf16, resident)
                                + 3 * H * 4)             # b1 / gamma / beta
                + tm * H * dec_bytes)                    # transform scratch

    while tile_m > 64 and vmem_est(tile_m) > int(0.55 * cap):
        tile_m //= 2

    tile_m = min(tile_m, _round_up(M, 16))
    n_m = -(-M // tile_m)
    tile_m = _round_up(-(-M // n_m), 16)     # rebalance: padding < one tile
    Mp = n_m * tile_m
    grid = (n_m, n_v)

    # --- operand preparation (pad + cast only when necessary) --------------
    x2d = sequence_output.reshape(M, H)
    if Mp != M:
        x2d = jnp.pad(x2d, ((0, Mp - M), (0, 0)))

    # Weight streams in bf16 with f32 accumulation.  Cast only if the caller
    # did not already store them in decoder_dtype (production should pre-store
    # bf16 so no per-call W2-sized astype HBM pass is paid).
    w1_c = W1 if W1.dtype == decoder_dtype else W1.astype(decoder_dtype)
    w2_c = W2 if W2.dtype == decoder_dtype else W2.astype(decoder_dtype)
    # TODO(synk): optional fp8 (e4m3) W2 + per-column scale for v7x.
    if Vp != V:
        w2_c = jnp.pad(w2_c, ((0, 0), (0, Vp - V)))
        b2 = jnp.pad(b2, ((0, Vp - V),))

    b1_2d = b1.reshape(1, H).astype(jnp.float32)
    g_2d = gamma.reshape(1, H).astype(jnp.float32)
    be_2d = beta.reshape(1, H).astype(jnp.float32)
    b2_2d = b2.reshape(1, Vp).astype(jnp.float32)

    # --- VMEM limit: estimate + headroom for j==0 f32 intermediates, capped
    # at 80% of physical VMEM (never the full 64 MiB on v7x) ----------------
    headroom = max(16 << 20, 6 * tile_m * H * 4)
    vmem_limit = int(min(max(vmem_est(tile_m) + headroom, 32 << 20),
                         int(cap * 0.80)))

    cost = pl.CostEstimate(
        flops=2 * Mp * H * (H + Vp) + 10 * Mp * H,
        transcendentals=Mp * H,                           # erf
        bytes_accessed=(Mp * H * x_bytes                  # activations in
                        + n_m * (H * Vp * dec_bytes       # W2 re-streamed
                                 + Vp * 4)                #   per M tile
                        + H * H * dec_bytes + 3 * H * 4   # resident weights
                        + Mp * Vp * out_bytes),           # logits out
    )

    def build(single_buffer_consts):
        if single_buffer_consts:
            def const_spec(shape):
                return pl.BlockSpec(shape, lambda i, j: (0, 0),
                                    pipeline_mode=pl.Buffered(1))
        else:
            def const_spec(shape):
                return pl.BlockSpec(shape, lambda i, j: (0, 0))

        return pl.pallas_call(
            _mlm_head_kernel(eps),
            out_shape=jax.ShapeDtypeStruct((Mp, Vp), out_dtype),
            grid_spec=pltpu.PrefetchScalarGridSpec(
                num_scalar_prefetch=0,
                grid=grid,
                in_specs=[
                    pl.BlockSpec((tile_m, H), lambda i, j: (i, 0)),   # x
                    const_spec((H, H)),                               # W1
                    const_spec((1, H)),                               # b1
                    const_spec((1, H)),                               # gamma
                    const_spec((1, H)),                               # beta
                    pl.BlockSpec((H, tile_v), lambda i, j: (0, j)),   # W2
                    pl.BlockSpec((1, tile_v), lambda i, j: (0, j)),   # dec bias
                ],
                out_specs=pl.BlockSpec((tile_m, tile_v), lambda i, j: (i, j)),
                scratch_shapes=[pltpu.VMEM((tile_m, H), decoder_dtype)],
            ),
            compiler_params=pltpu.CompilerParams(
                dimension_semantics=("parallel", "arbitrary"),
                vmem_limit_bytes=vmem_limit,
            ),
            cost_estimate=cost,
        )

    args = (x2d, w1_c, b1_2d, g_2d, be_2d, w2_c, b2_2d)
    if hasattr(pl, "Buffered"):
        try:
            out = build(True)(*args)
        except Exception:
            # pipeline_mode=pl.Buffered(1) not supported by this jax/Mosaic
            # build: fall back to default double-buffered resident weights.
            out = build(False)(*args)
    else:
        out = build(False)(*args)

    return out[:M, :V].reshape(B, S, V)


def _reference(sequence_output, params, eps=1e-12):
    """Pure-JAX f32 reference of the PyTorch forward pass."""
    x = sequence_output.astype(jnp.float32)
    w1 = params["dense_w"].astype(jnp.float32)
    w2 = params["decoder_w"].astype(jnp.float32)
    h = x @ w1 + params["dense_b"].astype(jnp.float32)
    h = h * 0.5 * (1.0 + lax.erf(h / math.sqrt(2.0)))
    mean = jnp.mean(h, axis=-1, keepdims=True)
    var = jnp.mean((h - mean) ** 2, axis=-1, keepdims=True)
    h = (h - mean) / jnp.sqrt(var + eps)
    h = h * params["ln_gamma"] + params["ln_beta"]
    return h @ w2 + params["decoder_b"].astype(jnp.float32)


def _init_params(key, hidden_size, vocab_size):
    k1, k2, k3 = jax.random.split(key, 3)
    bound1 = 1.0 / math.sqrt(hidden_size)
    return {
        # nn.Linear(hidden, hidden): weight/bias ~ U(-1/sqrt(H), 1/sqrt(H))
        "dense_w": jax.random.uniform(k1, (hidden_size, hidden_size),
                                      jnp.float32, -bound1, bound1),
        "dense_b": jax.random.uniform(k2, (hidden_size,),
                                      jnp.float32, -bound1, bound1),
        # nn.LayerNorm defaults
        "ln_gamma": jnp.ones((hidden_size,), jnp.float32),
        "ln_beta": jnp.zeros((hidden_size,), jnp.float32),
        # nn.Linear(hidden, vocab, bias=False) weight
        "decoder_w": jax.random.uniform(k3, (hidden_size, vocab_size),
                                        jnp.float32, -bound1, bound1),
        # self.bias = nn.Parameter(torch.zeros(vocab_size))
        "decoder_b": jnp.zeros((vocab_size,), jnp.float32),
    }


if __name__ == "__main__":
    # Small BERT-ish config that also exercises both padding paths:
    # M = B*S = 18 (not 16-aligned) and V = 1000 (not 128-aligned).
    B, S, H, V = 2, 9, 128, 1000
    eps = 1e-12

    key = jax.random.PRNGKey(0)
    kx, kp = jax.random.split(key)
    sequence_output = jax.random.normal(kx, (B, S, H), jnp.float32)
    params = _init_params(kp, H, V)

    # Store the big weight streams in bf16 ONCE (review: the per-call
    # W2.astype(bf16) was an extra full HBM pass over the decoder weight).
    run_params = dict(params)
    run_params["dense_w"] = params["dense_w"].astype(jnp.bfloat16)
    run_params["decoder_w"] = params["decoder_w"].astype(jnp.bfloat16)

    scores = bert_only_mlm_head(sequence_output, run_params, eps=eps)
    scores = jax.block_until_ready(scores)

    ref = _reference(sequence_output, params, eps=eps)
    assert scores.shape == (B, S, V), scores.shape
    max_err = float(jnp.max(jnp.abs(scores.astype(jnp.float32) - ref)))
    # bf16 weight streams + bf16 transform cache (with f32 MXU accumulation)
    # vs a pure-f32 reference: this is a deliberate precision tradeoff.
    assert max_err < 5e-2, max_err

    print("KERNEL_OK")
</pallas_src>

<mosaic_0001>
module attributes {stable_mosaic.version = 11 : i64} {
  func.func @kernel(%arg0: i32, %arg1: i32, %arg2: memref<32x128xf32, #tpu.memory_space<vmem>>, %arg3: memref<128x128xbf16, #tpu.memory_space<vmem>>, %arg4: memref<1x128xf32, #tpu.memory_space<vmem>>, %arg5: memref<1x128xf32, #tpu.memory_space<vmem>>, %arg6: memref<1x128xf32, #tpu.memory_space<vmem>>, %arg7: memref<128x1024xbf16, #tpu.memory_space<vmem>>, %arg8: memref<1x1024xf32, #tpu.memory_space<vmem>>, %arg9: memref<32x1024xf32, #tpu.memory_space<vmem>>, %arg10: memref<32x128xbf16, #tpu.memory_space<vmem>>) attributes {dimension_semantics = [#tpu.dimension_semantics<parallel>, #tpu.dimension_semantics<arbitrary>], iteration_bounds = array<i64: 1, 1>, scalar_prefetch = 0 : i64, scratch_operands = 1 : i64, tpu.core_type = #tpu.core_type<tc>, window_params = [{transform_indices = @transform_0, window_bounds = array<i64: 32, 128>}, {pipeline_mode = #tpu.pipeline_mode<synchronous>, transform_indices = @transform_1, window_bounds = array<i64: 128, 128>}, {pipeline_mode = #tpu.pipeline_mode<synchronous>, transform_indices = @transform_2, window_bounds = array<i64: 1, 128>}, {pipeline_mode = #tpu.pipeline_mode<synchronous>, transform_indices = @transform_3, window_bounds = array<i64: 1, 128>}, {pipeline_mode = #tpu.pipeline_mode<synchronous>, transform_indices = @transform_4, window_bounds = array<i64: 1, 128>}, {transform_indices = @transform_5, window_bounds = array<i64: 128, 1024>}, {transform_indices = @transform_6, window_bounds = array<i64: 1, 1024>}, {transform_indices = @transform_7, window_bounds = array<i64: 32, 1024>}]} {
    %c0_i32 = arith.constant 0 : i32
    %0 = arith.cmpi eq, %arg1, %c0_i32 : i32
    %1 = arith.extui %0 : i1 to i32
    %c0_i32_0 = arith.constant 0 : i32
    %2 = arith.cmpi ne, %1, %c0_i32_0 : i32
    scf.if %2 {
      %c0_8 = arith.constant 0 : index
      %c0_9 = arith.constant 0 : index
      %10 = vector.load %arg2[%c0_8, %c0_9] : memref<32x128xf32, #tpu.memory_space<vmem>>, vector<32x128xf32>
      %11 = arith.truncf %10 : vector<32x128xf32> to vector<32x128xbf16>
      %c0_10 = arith.constant 0 : index
      %c0_11 = arith.constant 0 : index
      %12 = vector.load %arg3[%c0_10, %c0_11] : memref<128x128xbf16, #tpu.memory_space<vmem>>, vector<128x128xbf16>
      %cst_12 = arith.constant dense<0.000000e+00> : vector<32x128xf32>
      %13 = tpu.matmul %11, %12, %cst_12 {dimension_numbers = #tpu.dot_dimension_numbers<[1], [0], [0], [1], [0, 0, 1, 1], [], []>} : vector<32x128xbf16>, vector<128x128xbf16>, vector<32x128xf32> -> vector<32x128xf32>
      %c0_13 = arith.constant 0 : index
      %c0_14 = arith.constant 0 : index
      %14 = vector.load %arg4[%c0_13, %c0_14] : memref<1x128xf32, #tpu.memory_space<vmem>>, vector<1x128xf32>
      %15 = vector.broadcast %14 : vector<1x128xf32> to vector<32x128xf32>
      %16 = arith.addf %13, %15 : vector<32x128xf32>
      %cst_15 = arith.constant 5.000000e-01 : f32
      %17 = vector.broadcast %cst_15 : f32 to vector<32x128xf32>
      %18 = arith.mulf %16, %17 : vector<32x128xf32>
      %cst_16 = arith.constant 0.707106769 : f32
      %19 = vector.broadcast %cst_16 : f32 to vector<32x128xf32>
      %20 = arith.mulf %16, %19 : vector<32x128xf32>
      %21 = math.erf %20 : vector<32x128xf32>
      %cst_17 = arith.constant 1.000000e+00 : f32
      %22 = vector.broadcast %cst_17 : f32 to vector<32x128xf32>
      %23 = arith.addf %22, %21 : vector<32x128xf32>
      %24 = arith.mulf %18, %23 : vector<32x128xf32>
      %cst_18 = arith.constant dense<0.000000e+00> : vector<32xf32>
      %25 = vector.multi_reduction <add>, %24, %cst_18 [1] : vector<32x128xf32> to vector<32xf32>
      %26 = vector.shape_cast %25 : vector<32xf32> to vector<32x1xf32>
      %cst_19 = arith.constant 1.280000e+02 : f32
      %27 = vector.broadcast %cst_19 : f32 to vector<32x1xf32>
      %28 = arith.divf %26, %27 : vector<32x1xf32>
      %29 = vector.broadcast %28 : vector<32x1xf32> to vector<32x128xf32>
      %30 = arith.subf %24, %29 : vector<32x128xf32>
      %31 = arith.mulf %30, %30 : vector<32x128xf32>
      %cst_20 = arith.constant dense<0.000000e+00> : vector<32xf32>
      %32 = vector.multi_reduction <add>, %31, %cst_20 [1] : vector<32x128xf32> to vector<32xf32>
      %33 = vector.shape_cast %32 : vector<32xf32> to vector<32x1xf32>
      %cst_21 = arith.constant 1.280000e+02 : f32
      %34 = vector.broadcast %cst_21 : f32 to vector<32x1xf32>
      %35 = arith.divf %33, %34 : vector<32x1xf32>
      %cst_22 = arith.constant 9.99999996E-13 : f32
      %36 = vector.broadcast %cst_22 : f32 to vector<32x1xf32>
      %37 = arith.addf %35, %36 : vector<32x1xf32>
      %38 = math.rsqrt %37 : vector<32x1xf32>
      %39 = vector.broadcast %38 : vector<32x1xf32> to vector<32x128xf32>
      %40 = arith.mulf %30, %39 : vector<32x128xf32>
      %c0_23 = arith.constant 0 : index
      %c0_24 = arith.constant 0 : index
      %41 = vector.load %arg5[%c0_23, %c0_24] : memref<1x128xf32, #tpu.memory_space<vmem>>, vector<1x128xf32>
      %42 = vector.broadcast %41 : vector<1x128xf32> to vector<32x128xf32>
      %43 = arith.mulf %40, %42 : vector<32x128xf32>
      %c0_25 = arith.constant 0 : index
      %c0_26 = arith.constant 0 : index
      %44 = vector.load %arg6[%c0_25, %c0_26] : memref<1x128xf32, #tpu.memory_space<vmem>>, vector<1x128xf32>
      %45 = vector.broadcast %44 : vector<1x128xf32> to vector<32x128xf32>
      %46 = arith.addf %43, %45 : vector<32x128xf32>
      %47 = arith.truncf %46 : vector<32x128xf32> to vector<32x128xbf16>
      %c0_27 = arith.constant 0 : index
      %c0_28 = arith.constant 0 : index
      %48 = vector.load %arg10[%c0_27, %c0_28] : memref<32x128xbf16, #tpu.memory_space<vmem>>, vector<32x128xbf16>
      tpu.vector_store %arg10[%c0_27, %c0_28], %47 {strides = array<i32>} : memref<32x128xbf16, #tpu.memory_space<vmem>>, vector<32x128xbf16>,
    } else {
    }
    %c0 = arith.constant 0 : index
    %c0_1 = arith.constant 0 : index
    %3 = vector.load %arg10[%c0, %c0_1] : memref<32x128xbf16, #tpu.memory_space<vmem>>, vector<32x128xbf16>
    %c0_2 = arith.constant 0 : index
    %c0_3 = arith.constant 0 : index
    %4 = vector.load %arg7[%c0_2, %c0_3] : memref<128x1024xbf16, #tpu.memory_space<vmem>>, vector<128x1024xbf16>
    %cst = arith.constant dense<0.000000e+00> : vector<32x1024xf32>
    %5 = tpu.matmul %3, %4, %cst {dimension_numbers = #tpu.dot_dimension_numbers<[1], [0], [0], [1], [0, 0, 1, 1], [], []>} : vector<32x128xbf16>, vector<128x1024xbf16>, vector<32x1024xf32> -> vector<32x1024xf32>
    %c0_4 = arith.constant 0 : index
    %c0_5 = arith.constant 0 : index
    %6 = vector.load %arg8[%c0_4, %c0_5] : memref<1x1024xf32, #tpu.memory_space<vmem>>, vector<1x1024xf32>
    %7 = vector.broadcast %6 : vector<1x1024xf32> to vector<32x1024xf32>
    %8 = arith.addf %5, %7 : vector<32x1024xf32>
    %c0_6 = arith.constant 0 : index
    %c0_7 = arith.constant 0 : index
    %9 = vector.load %arg9[%c0_6, %c0_7] : memref<32x1024xf32, #tpu.memory_space<vmem>>, vector<32x1024xf32>
    tpu.vector_store %arg9[%c0_6, %c0_7], %8 {strides = array<i32>} : memref<32x1024xf32, #tpu.memory_space<vmem>>, vector<32x1024xf32>,
    return
  }
  func.func @transform_0(%arg0: i32, %arg1: i32) -> (i32, i32) {
    %c0_i32 = arith.constant 0 : i32
    %c0_i32_0 = arith.constant 0 : i32
    return %arg0, %c0_i32 : i32, i32
  }
  func.func @transform_1(%arg0: i32, %arg1: i32) -> (i32, i32) {
    %c0_i32 = arith.constant 0 : i32
    %c0_i32_0 = arith.constant 0 : i32
    %c0_i32_1 = arith.constant 0 : i32
    return %c0_i32, %c0_i32_0 : i32, i32
  }
  func.func @transform_2(%arg0: i32, %arg1: i32) -> (i32, i32) {
    %c0_i32 = arith.constant 0 : i32
    %c0_i32_0 = arith.constant 0 : i32
    %c0_i32_1 = arith.constant 0 : i32
    return %c0_i32, %c0_i32_0 : i32, i32
  }
  func.func @transform_3(%arg0: i32, %arg1: i32) -> (i32, i32) {
    %c0_i32 = arith.constant 0 : i32
    %c0_i32_0 = arith.constant 0 : i32
    %c0_i32_1 = arith.constant 0 : i32
    return %c0_i32, %c0_i32_0 : i32, i32
  }
  func.func @transform_4(%arg0: i32, %arg1: i32) -> (i32, i32) {
    %c0_i32 = arith.constant 0 : i32
    %c0_i32_0 = arith.constant 0 : i32
    %c0_i32_1 = arith.constant 0 : i32
    return %c0_i32, %c0_i32_0 : i32, i32
  }
  func.func @transform_5(%arg0: i32, %arg1: i32) -> (i32, i32) {
    %c0_i32 = arith.constant 0 : i32
    %c0_i32_0 = arith.constant 0 : i32
    return %c0_i32, %arg1 : i32, i32
  }
  func.func @transform_6(%arg0: i32, %arg1: i32) -> (i32, i32) {
    %c0_i32 = arith.constant 0 : i32
    %c0_i32_0 = arith.constant 0 : i32
    return %c0_i32, %arg1 : i32, i32
  }
  func.func @transform_7(%arg0: i32, %arg1: i32) -> (i32, i32) {
    %c0_i32 = arith.constant 0 : i32
    return %arg0, %arg1 : i32, i32
  }
}

module attributes {stable_mosaic.version = 11 : i64} {
  func.func @kernel(%arg0: i32, %arg1: i32, %arg2: memref<32x128xf32, #tpu.memory_space<vmem>>, %arg3: memref<128x128xbf16, #tpu.memory_space<vmem>>, %arg4: memref<1x128xf32, #tpu.memory_space<vmem>>, %arg5: memref<1x128xf32, #tpu.memory_space<vmem>>, %arg6: memref<1x128xf32, #tpu.memory_space<vmem>>, %arg7: memref<128x1024xbf16, #tpu.memory_space<vmem>>, %arg8: memref<1x1024xf32, #tpu.memory_space<vmem>>, %arg9: memref<32x1024xf32, #tpu.memory_space<vmem>>, %arg10: memref<32x128xbf16, #tpu.memory_space<vmem>>) attributes {dimension_semantics = [#tpu.dimension_semantics<parallel>, #tpu.dimension_semantics<arbitrary>], iteration_bounds = array<i64: 1, 1>, scalar_prefetch = 0 : i64, scratch_operands = 1 : i64, tpu.core_type = #tpu.core_type<tc>, window_params = [{transform_indices = @transform_0, window_bounds = array<i64: 32, 128>}, {pipeline_mode = #tpu.pipeline_mode<synchronous>, transform_indices = @transform_1, window_bounds = array<i64: 128, 128>}, {pipeline_mode = #tpu.pipeline_mode<synchronous>, transform_indices = @transform_2, window_bounds = array<i64: 1, 128>}, {pipeline_mode = #tpu.pipeline_mode<synchronous>, transform_indices = @transform_3, window_bounds = array<i64: 1, 128>}, {pipeline_mode = #tpu.pipeline_mode<synchronous>, transform_indices = @transform_4, window_bounds = array<i64: 1, 128>}, {transform_indices = @transform_5, window_bounds = array<i64: 128, 1024>}, {transform_indices = @transform_6, window_bounds = array<i64: 1, 1024>}, {transform_indices = @transform_7, window_bounds = array<i64: 32, 1024>}]} {
    %c0_i32 = arith.constant 0 : i32
    %0 = arith.cmpi eq, %arg1, %c0_i32 : i32
    %1 = arith.extui %0 : i1 to i32
    %c0_i32_0 = arith.constant 0 : i32
    %2 = arith.cmpi ne, %1, %c0_i32_0 : i32
    scf.if %2 {
      %c0_8 = arith.constant 0 : index
      %c0_9 = arith.constant 0 : index
      %10 = vector.load %arg2[%c0_8, %c0_9] : memref<32x128xf32, #tpu.memory_space<vmem>>, vector<32x128xf32>
      %11 = arith.truncf %10 : vector<32x128xf32> to vector<32x128xbf16>
      %c0_10 = arith.constant 0 : index
      %c0_11 = arith.constant 0 : index
      %12 = vector.load %arg3[%c0_10, %c0_11] : memref<128x128xbf16, #tpu.memory_space<vmem>>, vector<128x128xbf16>
      %cst_12 = arith.constant dense<0.000000e+00> : vector<32x128xf32>
      %13 = tpu.matmul %11, %12, %cst_12 {dimension_numbers = #tpu.dot_dimension_numbers<[1], [0], [0], [1], [0, 0, 1, 1], [], []>} : vector<32x128xbf16>, vector<128x128xbf16>, vector<32x128xf32> -> vector<32x128xf32>
      %c0_13 = arith.constant 0 : index
      %c0_14 = arith.constant 0 : index
      %14 = vector.load %arg4[%c0_13, %c0_14] : memref<1x128xf32, #tpu.memory_space<vmem>>, vector<1x128xf32>
      %15 = vector.broadcast %14 : vector<1x128xf32> to vector<32x128xf32>
      %16 = arith.addf %13, %15 : vector<32x128xf32>
      %cst_15 = arith.constant 5.000000e-01 : f32
      %17 = vector.broadcast %cst_15 : f32 to vector<32x128xf32>
      %18 = arith.mulf %16, %17 : vector<32x128xf32>
      %cst_16 = arith.constant 0.707106769 : f32
      %19 = vector.broadcast %cst_16 : f32 to vector<32x128xf32>
      %20 = arith.mulf %16, %19 : vector<32x128xf32>
      %21 = math.erf %20 : vector<32x128xf32>
      %cst_17 = arith.constant 1.000000e+00 : f32
      %22 = vector.broadcast %cst_17 : f32 to vector<32x128xf32>
      %23 = arith.addf %22, %21 : vector<32x128xf32>
      %24 = arith.mulf %18, %23 : vector<32x128xf32>
      %cst_18 = arith.constant dense<0.000000e+00> : vector<32xf32>
      %25 = vector.multi_reduction <add>, %24, %cst_18 [1] : vector<32x128xf32> to vector<32xf32>
      %26 = vector.shape_cast %25 : vector<32xf32> to vector<32x1xf32>
      %cst_19 = arith.constant 1.280000e+02 : f32
      %27 = vector.broadcast %cst_19 : f32 to vector<32x1xf32>
      %28 = arith.divf %26, %27 : vector<32x1xf32>
      %29 = vector.broadcast %28 : vector<32x1xf32> to vector<32x128xf32>
      %30 = arith.subf %24, %29 : vector<32x128xf32>
      %31 = arith.mulf %30, %30 : vector<32x128xf32>
      %cst_20 = arith.constant dense<0.000000e+00> : vector<32xf32>
      %32 = vector.multi_reduction <add>, %31, %cst_20 [1] : vector<32x128xf32> to vector<32xf32>
      %33 = vector.shape_cast %32 : vector<32xf32> to vector<32x1xf32>
      %cst_21 = arith.constant 1.280000e+02 : f32
      %34 = vector.broadcast %cst_21 : f32 to vector<32x1xf32>
      %35 = arith.divf %33, %34 : vector<32x1xf32>
      %cst_22 = arith.constant 9.99999996E-13 : f32
      %36 = vector.broadcast %cst_22 : f32 to vector<32x1xf32>
      %37 = arith.addf %35, %36 : vector<32x1xf32>
      %38 = math.rsqrt %37 : vector<32x1xf32>
      %39 = vector.broadcast %38 : vector<32x1xf32> to vector<32x128xf32>
      %40 = arith.mulf %30, %39 : vector<32x128xf32>
      %c0_23 = arith.constant 0 : index
      %c0_24 = arith.constant 0 : index
      %41 = vector.load %arg5[%c0_23, %c0_24] : memref<1x128xf32, #tpu.memory_space<vmem>>, vector<1x128xf32>
      %42 = vector.broadcast %41 : vector<1x128xf32> to vector<32x128xf32>
      %43 = arith.mulf %40, %42 : vector<32x128xf32>
      %c0_25 = arith.constant 0 : index
      %c0_26 = arith.constant 0 : index
      %44 = vector.load %arg6[%c0_25, %c0_26] : memref<1x128xf32, #tpu.memory_space<vmem>>, vector<1x128xf32>
      %45 = vector.broadcast %44 : vector<1x128xf32> to vector<32x128xf32>
      %46 = arith.addf %43, %45 : vector<32x128xf32>
      %47 = arith.truncf %46 : vector<32x128xf32> to vector<32x128xbf16>
      %c0_27 = arith.constant 0 : index
      %c0_28 = arith.constant 0 : index
      %48 = vector.load %arg10[%c0_27, %c0_28] : memref<32x128xbf16, #tpu.memory_space<vmem>>, vector<32x128xbf16>
      tpu.vector_store %arg10[%c0_27, %c0_28], %47 {strides = array<i32>} : memref<32x128xbf16, #tpu.memory_space<vmem>>, vector<32x128xbf16>,
    } else {
    }
    %c0 = arith.constant 0 : index
    %c0_1 = arith.constant 0 : index
    %3 = vector.load %arg10[%c0, %c0_1] : memref<32x128xbf16, #tpu.memory_space<vmem>>, vector<32x128xbf16>
    %c0_2 = arith.constant 0 : index
    %c0_3 = arith.constant 0 : index
    %4 = vector.load %arg7[%c0_2, %c0_3] : memref<128x1024xbf16, #tpu.memory_space<vmem>>, vector<128x1024xbf16>
    %cst = arith.constant dense<0.000000e+00> : vector<32x1024xf32>
    %5 = tpu.matmul %3, %4, %cst {dimension_numbers = #tpu.dot_dimension_numbers<[1], [0], [0], [1], [0, 0, 1, 1], [], []>} : vector<32x128xbf16>, vector<128x1024xbf16>, vector<32x1024xf32> -> vector<32x1024xf32>
    %c0_4 = arith.constant 0 : index
    %c0_5 = arith.constant 0 : index
    %6 = vector.load %arg8[%c0_4, %c0_5] : memref<1x1024xf32, #tpu.memory_space<vmem>>, vector<1x1024xf32>
    %7 = vector.broadcast %6 : vector<1x1024xf32> to vector<32x1024xf32>
    %8 = arith.addf %5, %7 : vector<32x1024xf32>
    %c0_6 = arith.constant 0 : index
    %c0_7 = arith.constant 0 : index
    %9 = vector.load %arg9[%c0_6, %c0_7] : memref<32x1024xf32, #tpu.memory_space<vmem>>, vector<32x1024xf32>
    tpu.vector_store %arg9[%c0_6, %c0_7], %8 {strides = array<i32>} : memref<32x1024xf32, #tpu.memory_space<vmem>>, vector<32x1024xf32>,
    return
  }
  func.func @transform_0(%arg0: i32, %arg1: i32) -> (i32, i32) {
    %c0_i32 = arith.constant 0 : i32
    %c0_i32_0 = arith.constant 0 : i32
    return %arg0, %c0_i32 : i32, i32
  }
  func.func @transform_1(%arg0: i32, %arg1: i32) -> (i32, i32) {
    %c0_i32 = arith.constant 0 : i32
    %c0_i32_0 = arith.constant 0 : i32
    %c0_i32_1 = arith.constant 0 : i32
    return %c0_i32, %c0_i32_0 : i32, i32
  }
  func.func @transform_2(%arg0: i32, %arg1: i32) -> (i32, i32) {
    %c0_i32 = arith.constant 0 : i32
    %c0_i32_0 = arith.constant 0 : i32
    %c0_i32_1 = arith.constant 0 : i32
    return %c0_i32, %c0_i32_0 : i32, i32
  }
  func.func @transform_3(%arg0: i32, %arg1: i32) -> (i32, i32) {
    %c0_i32 = arith.constant 0 : i32
    %c0_i32_0 = arith.constant 0 : i32
    %c0_i32_1 = arith.constant 0 : i32
    return %c0_i32, %c0_i32_0 : i32, i32
  }
  func.func @transform_4(%arg0: i32, %arg1: i32) -> (i32, i32) {
    %c0_i32 = arith.constant 0 : i32
    %c0_i32_0 = arith.constant 0 : i32
    %c0_i32_1 = arith.constant 0 : i32
    return %c0_i32, %c0_i32_0 : i32, i32
  }
  func.func @transform_5(%arg0: i32, %arg1: i32) -> (i32, i32) {
    %c0_i32 = arith.constant 0 : i32
    %c0_i32_0 = arith.constant 0 : i32
    return %c0_i32, %arg1 : i32, i32
  }
  func.func @transform_6(%arg0: i32, %arg1: i32) -> (i32, i32) {
    %c0_i32 = arith.constant 0 : i32
    %c0_i32_0 = arith.constant 0 : i32
    return %c0_i32, %arg1 : i32, i32
  }
  func.func @transform_7(%arg0: i32, %arg1: i32) -> (i32, i32) {
    %c0_i32 = arith.constant 0 : i32
    return %arg0, %arg1 : i32, i32
  }
}

</mosaic_0001>

<bundles_post_ra>
// kernel: tpu_custom_call.1
= control target key start
LH: loop header
LB: loop body
LE: loop exit
PB: predicated region body
PF: predicated region fallthrough
CT: control target
= control target key end

     0   :  { %12 = vsyncpa [#allocation4], 0  ;;  %s1944_s0 = inlined_call_operand.hbm [shape: f32[32,128], index: 0, kind: input, shape index: {}]   ;;  %s1945_s1 = inlined_call_operand.hbm [shape: bf16[128,128], index: 1, kind: input, shape index: {}]   ;;  %s1946_s2 = inlined_call_operand.vmem [shape: f32[1,128], index: 2, kind: input, shape index: {}]   ;;  %s1947_s3 = inlined_call_operand.vmem [shape: f32[1,128], index: 3, kind: input, shape index: {}]   ;;  %s1948_s4 = inlined_call_operand.vmem [shape: f32[1,128], index: 4, kind: input, shape index: {}]   ;;  %s1949_s5 = inlined_call_operand.hbm [shape: bf16[128,1024], index: 5, kind: input, shape index: {}]   ;;  %s1950_s6 = inlined_call_operand.hbm [shape: f32[1,1024], index: 6, kind: input, shape index: {}]   ;;  %s1951_s7 = inlined_call_operand.hbm [shape: f32[32,1024], index: 7, kind: output, shape index: {}]  }
   0x1   :  { %13 = vsyncpa [#allocation7], 0 }
   0x2   :  { %14 = vsyncpa [#allocation10], 0  ;;  %s33_s26 = sshll.u32 %s1945_s1, 4  ;;  %s34_s26 = int_to_ptr.hbm [resolvable:$true] %s33_s26 }
   0x3   :  { %15 = vsyncpa [#allocation5], 0  ;;  %s1650_s27 = smov [#allocation6]   ;;  %s20_s8 = sshll.u32 %s1944_s0, 4  ;;  %s21_s8 = int_to_ptr.hbm [resolvable:$true] %s20_s8 }
   0x4   :  { %s35_s28 = sshll.u32 %s1650_s27, 4  ;;  %s1651_s9 = smov 64   ;;  %s36_s28 = int_to_ptr.vmem [resolvable:$true] %s35_s28 }
   0x5   :  { %s1652_s10 = smov 4   ;;  %s1653_s11 = smov [#allocation3]  }
   0x6   :  { %41 = dma.hbm_to_vmem [thread:$0]  %s34_s26, 1024, %s36_s28, [#allocation7], %s1651_s9, %s1651_s9, %s1652_s10  }
   0x7   :  { %s22_s12 = sshll.u32 %s1653_s11, 4  ;;  %s1654_s13 = smov 128   ;;  %s23_s12 = int_to_ptr.vmem [resolvable:$true] %s22_s12 }
   0x8   :  { %s1655_s1 = smov 8   ;;  %s52_s16 = sshll.u32 %s1949_s5, 4  ;;  %s53_s16 = int_to_ptr.hbm [resolvable:$true] %s52_s16 }
   0x9   :  { %28 = dma.hbm_to_vmem [thread:$0]  %s21_s8, 512, %s23_s12, [#allocation4], %s1654_s13, %s1654_s13, %s1655_s1  }
   0xa   :  { %s1656_s17 = smov [#allocation8]   ;;  %s66_s20 = sshll.u32 %s1950_s6, 4  ;;  %s67_s20 = int_to_ptr.hbm [resolvable:$true] %s66_s20 }
   0xb   :  { %s54_s18 = sshll.u32 %s1656_s17, 4  ;;  %s1657_s21 = smov 512   ;;  %s55_s18 = int_to_ptr.vmem [resolvable:$true] %s54_s18 }
   0xc   :  { %s1658_s22 = smov 32   ;;  %s1659_s23 = smov [#allocation9]  }
   0xd   :  { %60 = dma.hbm_to_vmem [thread:$0]  %s53_s16, 8192, %s55_s18, [#allocation7], %s1657_s21, %s1657_s21, %s1658_s22  }
   0xe   :  { %s68_s24 = sshll.u32 %s1659_s23, 4  ;;  %s69_s24 = int_to_ptr.vmem [resolvable:$true] %s68_s24 }
   0xf   :  { %71 = dma.hbm_to_vmem [thread:$0]  %s67_s20, 128, %s69_s24, [#allocation10]  }
  0x10   :  { %1642 = dma.done.wait [#allocation4], 512  }
  0x11   :  { %1643 = vsyncadd [#allocation4], 4294966784 }
  0x12   :  { %1644 = dma.done.wait [#allocation7], 9216  }
  0x13   :  { %1645 = vsyncadd [#allocation7], 4294958080 }
  0x14   :  { %1646 = dma.done.wait [#allocation10], 128  }
  0x15   :  { %1647 = vsyncadd [#allocation10], 4294967168  ;;  %v1402_v0 = vld [vmem:[#allocation6 + $0x38] sm:$0xff]  ;;  %v1401_v1 = vld [vmem:[#allocation6 + $0x30] sm:$0xff]  ;;  %s1080_s30 = sshll.u32 %s1951_s7, 4  ;;  %s1662_s8 = smov 1024   ;;  %s1081_s30 = int_to_ptr.hbm [resolvable:$true] %s1080_s30 }
  0x16   :  { %166 = vmatpush.bf16.msra.mxu0 %v1402_v0  ;;  %v1400_v2 = vld [vmem:[#allocation6 + $0x28] sm:$0xff]  ;;  %v1399_v3 = vld [vmem:[#allocation6 + $0x20] sm:$0xff]  ;;  %v1398_v4 = vld [vmem:[#allocation6 + $0x18] sm:$0xff] }
  0x17   :  { %v1397_v5 = vld [vmem:[#allocation6 + $0x10] sm:$0xff]  ;;  %v1396_v6 = vld [vmem:[#allocation6 + $0x8] sm:$0xff]  ;;  %v1395_v7 = vld [vmem:[#allocation6] sm:$0xff] }
  0x18   :  { %v92_v8 = vld [vmem:[#allocation3] sm:$0xff]  ;;  %v93_v9 = vld [vmem:[#allocation3 + $0x8] sm:$0xff]  ;;  %v94_v11 = vld [vmem:[#allocation3 + $0x10] sm:$0xff] }
  0x19   :  { %v96_v10 = vpack.c.bf16 %v93_v9, %v92_v8  ;;  %v95_v12 = vld [vmem:[#allocation3 + $0x18] sm:$0xff]  ;;  %v1501_v14 = vld [vmem:[%s1946_s2] ss:$0 sm:$0xff] }
  0x1a   :  { %167 = vmatpush.bf16.msra.mxu0 %v1401_v1  ;;  %v97_v13 = vpack.c.bf16 %v95_v12, %v94_v11 }
  0x1e   :  { %168 = vmatpush.bf16.msra.mxu0 %v1400_v2 }
  0x22   :  { %169 = vmatpush.bf16.msra.mxu0 %v1399_v3 }
  0x26   :  { %170 = vmatpush.bf16.msra.mxu0 %v1398_v4 }
  0x2a   :  { %171 = vmatpush.bf16.msra.mxu0 %v1397_v5 }
  0x2e   :  { %172 = vmatpush.bf16.msra.mxu0 %v1396_v6 }
  0x32   :  { %173 = vmatpush.bf16.msra.mxu0 %v1395_v7 }
  0x35   :  { %174 = vmatmul.bf16.vlgmr.msra.gmra.mxu0 %v96_v10 }
  0x45   :  { %179 = vmatmul.bf16.gmra.mxu0 %v97_v13 }
  0xb2   :  { %v175_v15 = vpop.f32.mrf.mxu0 }
  0xb3   :  { %v1720_v16 = vadd.f32 %v1501_v14, %v175_v15 }
  0xb5   :  { %v1723_v17 = vmul.f32 0.70710677, %v1720_v16 }
  0xb7   :  { %v193_v18 = vmul.f32 %v1723_v17, %v1723_v17 }
  0xb9   :  { %v194_v19 = vmin.f32 %v193_v18, 16.0 }
  0xba   :  { %v177_v20 = vpop.f32.mrf.mxu0 }
  0xbb   :  { %v195_v21 = vmul.f32 2.1237322e-06, %v194_v19  ;;  %v1727_v22 = vadd.f32 %v1501_v14, %v177_v20  ;;  %v206_v23 = vmul.f32 3.8918573e-05, %v194_v19 }
  0xbd   :  { %v196_v24 = vadd.f32 0.00028619796, %v195_v21  ;;  %v1730_v25 = vmul.f32 0.70710677, %v1727_v22  ;;  %v207_v26 = vadd.f32 0.001143296, %v206_v23 }
  0xbf   :  { %v197_v27 = vmul.f32 %v196_v24, %v194_v19  ;;  %v233_v28 = vmul.f32 %v1730_v25, %v1730_v25  ;;  %v208_v29 = vmul.f32 %v207_v26, %v194_v19 }
  0xc1   :  { %v198_v30 = vadd.f32 0.0036580483, %v197_v27  ;;  %v1734_v31 = vmin.f32 %v233_v28, 16.0  ;;  %v209_v33 = vadd.f32 0.014752088, %v208_v29 }
  0xc2   :  { %v180_v32 = vpop.f32.mrf.mxu0 }
  0xc3   :  { %v235_v34 = vmul.f32 2.1237322e-06, %v1734_v31  ;;  %v1737_v35 = vadd.f32 %v1501_v14, %v180_v32  ;;  %v246_v36 = vmul.f32 3.8918573e-05, %v1734_v31  ;;  %v210_v37 = vmul.f32 %v209_v33, %v194_v19 }
  0xc4   :  { %v199_v38 = vmul.f32 %v198_v30, %v194_v19 }
  0xc5   :  { %v236_v39 = vadd.f32 0.00028619796, %v235_v34  ;;  %v1741_v40 = vmul.f32 0.70710677, %v1737_v35  ;;  %v211_v41 = vadd.f32 0.112945676, %v210_v37 }
  0xc6   :  { %v247_v42 = vadd.f32 0.001143296, %v246_v36  ;;  %v200_v47 = vadd.f32 0.05243302, %v199_v38 }
  0xc7   :  { %v237_v43 = vmul.f32 %v236_v39, %v1734_v31  ;;  %v273_v44 = vmul.f32 %v1741_v40, %v1741_v40  ;;  %v212_v45 = vmul.f32 %v211_v41, %v194_v19 }
  0xc8   :  { %v248_v46 = vmul.f32 %v247_v42, %v1734_v31  ;;  %v201_v58 = vmul.f32 %v200_v47, %v194_v19 }
  0xc9   :  { %v238_v48 = vadd.f32 0.0036580483, %v237_v43  ;;  %v1747_v49 = vmin.f32 %v273_v44, 16.0  ;;  %v213_v51 = vadd.f32 0.4994258, %v212_v45 }
  0xca   :  { %v182_v50 = vpop.f32.mrf.mxu0  ;;  %v249_v52 = vadd.f32 0.014752088, %v248_v46  ;;  %v202_v3 = vadd.f32 0.18741608, %v201_v58 }
  0xcb   :  { %v1749_v53 = vadd.f32 %v1501_v14, %v182_v50  ;;  %v275_v54 = vmul.f32 2.1237322e-06, %v1747_v49  ;;  %v214_v55 = vmul.f32 %v213_v51, %v194_v19  ;;  %v286_v57 = vmul.f32 3.8918573e-05, %v1747_v49 }
  0xcc   :  { %v250_v56 = vmul.f32 %v249_v52, %v1734_v31  ;;  %v239_v59 = vmul.f32 %v238_v48, %v1734_v31  ;;  %v203_v13 = vmul.f32 %v202_v3, %v194_v19 }
  0xcd   :  { %v276_v60 = vadd.f32 0.00028619796, %v275_v54  ;;  %v1756_v61 = vmul.f32 0.70710677, %v1749_v53  ;;  %v215_v62 = vadd.f32 1.0, %v214_v55 }
  0xce   :  { %v251_v63 = vadd.f32 0.112945676, %v250_v56  ;;  %v287_v0 = vadd.f32 0.001143296, %v286_v57  ;;  %v240_v5 = vadd.f32 0.05243302, %v239_v59 }
  0xcf   :  { %v277_v1 = vmul.f32 %v276_v60, %v1747_v49  ;;  %v313_v2 = vmul.f32 %v1756_v61, %v1756_v61  ;;  %1504 = vrcp.f32 %v215_v62  ;;  %v204_v19 = vadd.f32 1.1283791, %v203_v13 }
  0xd0   :  { %v252_v4 = vmul.f32 %v251_v63, %v1734_v31  ;;  %v288_v7 = vmul.f32 %v287_v0, %v1747_v49  ;;  %v241_v18 = vmul.f32 %v240_v5, %v1734_v31  ;;  %v227_v34 = vand.u32 2147483648, %v215_v62 }
  0xd1   :  { %v1762_v6 = vmin.f32 %v313_v2, 16.0  ;;  %v278_v8 = vadd.f32 0.0036580483, %v277_v1  ;;  %v225_v38 = vand.u32 2147483647, %v215_v62  ;;  %vm221_vm1 = vweird.f32 %v215_v62 }
  0xd2   :  { %v253_v9 = vadd.f32 0.4994258, %v252_v4  ;;  %v289_v11 = vadd.f32 0.014752088, %v288_v7  ;;  %v242_v33 = vadd.f32 0.18741608, %v241_v18  ;;  %v205_v46 = vmul.f32 %v204_v19, %v1723_v17 }
  0xd3   :  { %v315_v10 = vmul.f32 2.1237322e-06, %v1762_v6  ;;  %v326_v12 = vmul.f32 3.8918573e-05, %v1762_v6  ;;  %v279_v27 = vmul.f32 %v278_v8, %v1747_v49  ;;  %v228_v47 = vor.u32 1.1754944e-38, %v227_v34 }
  0xd4   :  { %v254_v14 = vmul.f32 %v253_v9, %v1734_v31  ;;  %v290_v21 = vmul.f32 %v289_v11, %v1747_v49  ;;  %v243_v51 = vmul.f32 %v242_v33, %v1734_v31  ;;  %vm226_vm3 = vcmp.eq.f32.partialorder %v225_v38, 8.507059e+37 }
  0xd5   :  { %v1505_v15 = vpop.eup %1504  ;;  %v316_v20 = vadd.f32 0.00028619796, %v315_v10  ;;  %v327_v23 = vadd.f32 0.001143296, %v326_v12  ;;  %v280_v41 = vadd.f32 0.05243302, %v279_v27 }
  0xd6   :  { %v217_v24 = vmul.f32 %v1505_v15, %v215_v62  ;;  %v255_v26 = vadd.f32 1.0, %v254_v14  ;;  %v291_v28 = vadd.f32 0.112945676, %v290_v21  ;;  %vm222_vm0 = vweird.f32 %v1505_v15 }
  0xd7   :  { %v328_v29 = vmul.f32 %v327_v23, %v1762_v6  ;;  %v317_v30 = vmul.f32 %v316_v20, %v1762_v6  ;;  %vm223_vm2 = vmor %vm221_vm1, %vm222_vm0  ;;  %v281_v55 = vmul.f32 %v280_v41, %v1747_v49  ;;  %v244_v63 = vadd.f32 1.1283791, %v243_v51 }
  0xd8   :  { %v218_v32 = vsub.f32 1.0, %v217_v24  ;;  %1506 = vrcp.f32 %v255_v26  ;;  %v292_v36 = vmul.f32 %v291_v28, %v1747_v49  ;;  %v267_v1 = vand.u32 2147483648, %v255_v26 }
  0xd9   :  { %v329_v39 = vadd.f32 0.014752088, %v328_v29  ;;  %v318_v43 = vadd.f32 0.0036580483, %v317_v30  ;;  %v265_v31 = vand.u32 2147483647, %v255_v26  ;;  %vm261_vm5 = vweird.f32 %v255_v26 }
  0xda   :  { %v219_v37 = vmul.f32 %v1505_v15, %v218_v32  ;;  %v293_v42 = vadd.f32 0.4994258, %v292_v36  ;;  %v185_v4 = vmul.f32 0.5, %v1720_v16  ;;  %v282_v5 = vadd.f32 0.18741608, %v281_v55 }
  0xdb   :  { %v330_v45 = vmul.f32 %v329_v39, %v1762_v6  ;;  %v319_v58 = vmul.f32 %v318_v43, %v1762_v6  ;;  %v268_v12 = vor.u32 1.1754944e-38, %v267_v1  ;;  %v245_v13 = vmul.f32 %v244_v63, %v1730_v25 }
  0xdc   :  { %v220_v44 = vadd.f32 %v1505_v15, %v219_v37  ;;  %v294_v48 = vmul.f32 %v293_v42, %v1747_v49  ;;  %vm266_vm7 = vcmp.eq.f32.partialorder %v265_v31, 8.507059e+37  ;;  %v283_v20 = vmul.f32 %v282_v5, %v1747_v49 }
  0xdd   :  { %v331_v54 = vadd.f32 0.112945676, %v330_v45  ;;  %v320_v7 = vadd.f32 0.05243302, %v319_v58  ;;  %v186_v28 = vmul.f32 0.5, %v1727_v22  ;;  %v1660_v63 = vmov 128.0  }
  0xde   :  { %v1507_v50 = vpop.eup %1506  ;;  %v224_v52 = vsel %vm223_vm2, %v1505_v15, %v220_v44  ;;  %v295_v60 = vadd.f32 1.0, %v294_v48  ;;  %v284_v29 = vadd.f32 1.1283791, %v283_v20 }
  0xdf   :  { %v229_v56 = vsel %vm226_vm3, %v228_v47, %v224_v52  ;;  %v257_v57 = vmul.f32 %v1507_v50, %v255_v26  ;;  %v332_v17 = vmul.f32 %v331_v54, %v1762_v6  ;;  %vm262_vm4 = vweird.f32 %v1507_v50 }
  0xe0   :  { %v230_v59 = vmul.f32 %v229_v56, %v205_v46  ;;  %1508 = vrcp.f32 %v295_v60  ;;  %vm263_vm6 = vmor %vm261_vm5, %vm262_vm4  ;;  %v321_v16 = vmul.f32 %v320_v7, %v1762_v6  ;;  %v307_v30 = vand.u32 2147483648, %v295_v60 }
  0xe1   :  { %v258_v62 = vsub.f32 1.0, %v257_v57  ;;  %v333_v3 = vadd.f32 0.4994258, %v332_v17  ;;  %v305_v33 = vand.u32 2147483647, %v295_v60  ;;  %vm301_vm9 = vweird.f32 %v295_v60 }
  0xe2   :  { %v1127_v0 = vclamps-f32 %v230_v59, 1.0  ;;  %v322_v25 = vadd.f32 0.18741608, %v321_v16  ;;  %v308_v38 = vor.u32 1.1754944e-38, %v307_v30  ;;  %v285_v41 = vmul.f32 %v284_v29, %v1741_v40  ;;  %v1466_v29 = vld [vmem:[#allocation8 + $0x1e4] sm:$0xf0] }
  0xe3   :  { %v259_v2 = vmul.f32 %v1507_v50, %v258_v62  ;;  %v334_v10 = vmul.f32 %v333_v3, %v1762_v6  ;;  %vm306_vm11 = vcmp.eq.f32.partialorder %v305_v33, 8.507059e+37 }
  0xe4   :  { %v353_v8 = vadd.f32 1.0, %v1127_v0  ;;  %v323_v37 = vmul.f32 %v322_v25, %v1762_v6  ;;  %v187_v6 = vmul.f32 0.5, %v1737_v35 }
  0xe5   :  { %v260_v9 = vadd.f32 %v1507_v50, %v259_v2  ;;  %v335_v15 = vadd.f32 1.0, %v334_v10 }
  0xe6   :  { %v1783_v11 = vmul.f32 %v353_v8, %v185_v4  ;;  %v1509_v18 = vpop.eup %1508  ;;  %v324_v46 = vadd.f32 1.1283791, %v323_v37 }
  0xe7   :  { %v264_v14 = vsel %vm263_vm6, %v1507_v50, %v260_v9  ;;  %v297_v24 = vmul.f32 %v1509_v18, %v295_v60  ;;  %1510 = vrcp.f32 %v335_v15  ;;  %vm302_vm8 = vweird.f32 %v1509_v18 }
  0xe8   :  { %361 = vadd.xlane.f32.xlu0 %v1783_v11  ;;  %v269_v21 = vsel %vm266_vm7, %v268_v12, %v264_v14  ;;  %vm303_vm10 = vmor %vm301_vm9, %vm302_vm8  ;;  %v347_v45 = vand.u32 2147483648, %v335_v15  ;;  %v345_v48 = vand.u32 2147483647, %v335_v15  ;;  %vm341_vm13 = vweird.f32 %v335_v15 }
  0xe9   :  { %v270_v23 = vmul.f32 %v269_v21, %v245_v13  ;;  %v298_v27 = vsub.f32 1.0, %v297_v24  ;;  %v325_v40 = vmul.f32 %v324_v46, %v1756_v61  ;;  %v188_v60 = vmul.f32 0.5, %v1749_v53  ;;  %v1365_v21 = vld [vmem:[#allocation8 + $0x1c0] sm:$0xf]  ;;  %v1461_v24 = vld [vmem:[#allocation8 + $0x1c4] sm:$0xf] }
  0xea   :  { %v348_v54 = vor.u32 1.1754944e-38, %v347_v45  ;;  %vm346_vm15 = vcmp.eq.f32.partialorder %v345_v48, 8.507059e+37  ;;  %1512 = vrcp.f32 %v1660_v63  ;;  %v1301_v46 = vld [vmem:[#allocation8 + $0x140] sm:$0xf]  ;;  %v1445_v48 = vld [vmem:[#allocation8 + $0x144] sm:$0xf] }
  0xeb   :  { %v1128_v26 = vclamps-f32 %v270_v23, 1.0  ;;  %v299_v19 = vmul.f32 %v1509_v18, %v298_v27  ;;  %v1465_v23 = vld [vmem:[#allocation8 + $0x1dc] sm:$0xf0]  ;;  %v1367_v27 = vld [vmem:[#allocation8 + $0x1e0] sm:$0xf0] }
  0xec   :  { %v1370_v25 = vor.u32 %v1461_v24, %v1367_v27  ;;  %v1277_v63 = vld [vmem:[#allocation8 + $0x108] sm:$0xf]  ;;  %v1205_v27 = vld [vmem:[#allocation8 + $0x80] sm:$0xf] }
  0xed   :  { %v354_v32 = vadd.f32 1.0, %v1128_v26  ;;  %v1511_v49 = vpop.eup %1510  ;;  %v300_v36 = vadd.f32 %v1509_v18, %v299_v19  ;;  %v1366_v26 = vor.u32 %v1465_v23, %v1365_v21  ;;  %v1375_v19 = vld [vmem:[#allocation8 + $0x1e8] sm:$0xf0] }
  0xee   :  { %v337_v39 = vmul.f32 %v1511_v49, %v335_v15  ;;  %vm342_vm12 = vweird.f32 %v1511_v49  ;;  %909 = vmatpush.bf16.msra.mxu2 %v1370_v25  ;;  %v1430_v21 = vld [vmem:[#allocation8 + $0xcc] sm:$0xf] }
  0xef   :  { %v358_v34 = vmul.f32 %v354_v32, %v186_v28  ;;  %v304_v22 = vsel %vm303_vm10, %v1509_v18, %v300_v36  ;;  %vm343_vm14 = vmor %vm341_vm13, %vm342_vm12  ;;  %v1373_v28 = vld [vmem:[#allocation8 + $0x1c8] sm:$0xf]  ;;  %v1462_v32 = vld [vmem:[#allocation8 + $0x1cc] sm:$0xf]  ;;  %890 = vmatpush.bf16.msra.mxu1 %v1366_v26 }
  0xf0   :  { %v309_v42 = vsel %vm306_vm11, %v308_v38, %v304_v22  ;;  %v338_v43 = vsub.f32 1.0, %v337_v39  ;;  %v1513_v35 = vpop.eup %1512  ;;  %v1374_v30 = vor.u32 %v1466_v29, %v1373_v28  ;;  %v1378_v33 = vor.u32 %v1462_v32, %v1375_v19  ;;  %v1453_v36 = vld [vmem:[#allocation8 + $0x184] sm:$0xf]  ;;  %v1341_v39 = vld [vmem:[#allocation8 + $0x188] sm:$0xf] }
  0xf1   :  { %363 = vadd.xlane.f32.xlu0 %v358_v34  ;;  %v310_v44 = vmul.f32 %v309_v42, %v285_v41  ;;  %v370_v0 = vmul.f32 128.0, %v1513_v35  ;;  %vm374_vm0 = vweird.f32 %v1513_v35  ;;  %v1335_v38 = vld [vmem:[#allocation8 + $0x1a0] sm:$0xf0]  ;;  %v1458_v41 = vld [vmem:[#allocation8 + $0x1a4] sm:$0xf0] }
  0xf2   :  { %v339_v47 = vmul.f32 %v1511_v49, %v338_v43  ;;  %928 = vmatpush.bf16.msra.mxu3 %v1374_v30  ;;  %947 = vmatpush.bf16.msrb.mxu0 %v1378_v33  ;;  %v1338_v22 = vor.u32 %v1453_v36, %v1335_v38  ;;  %v1342_v42 = vor.u32 %v1458_v41, %v1341_v39  ;;  %v1454_v43 = vld [vmem:[#allocation8 + $0x18c] sm:$0xf]  ;;  %v1425_v28 = vld [vmem:[#allocation8 + $0x9c] sm:$0xf0]  ;;  %v1421_v29 = vld [vmem:[#allocation8 + $0x84] sm:$0xf] }
  0xf3   :  { %v1129_v50 = vclamps-f32 %v310_v44, 1.0  ;;  %v371_v1 = vsub.f32 1.0, %v370_v0  ;;  %v1343_v44 = vld [vmem:[#allocation8 + $0x1a8] sm:$0xf0]  ;;  %v1206_v25 = vor.u32 %v1425_v28, %v1205_v27  ;;  %v1207_v30 = vld [vmem:[#allocation8 + $0xa0] sm:$0xf0] }
  0xf4   :  { %v340_v51 = vadd.f32 %v1511_v49, %v339_v47  ;;  %v1346_v45 = vor.u32 %v1454_v43, %v1343_v44  ;;  %910 = vmatpush.bf16.msra.mxu2 %v1338_v22  ;;  %v1449_v47 = vld [vmem:[#allocation8 + $0x15c] sm:$0xf0]  ;;  %v1247_v23 = vld [vmem:[#allocation8 + $0xe8] sm:$0xf0]  ;;  %v1213_v32 = vld [vmem:[#allocation8 + $0x88] sm:$0xf]  ;;  %v1210_v33 = vor.u32 %v1421_v29, %v1207_v30 }
  0xf5   :  { %v355_v52 = vadd.f32 1.0, %v1129_v50  ;;  %v372_v2 = vmul.f32 %v1513_v35, %v371_v1  ;;  %v1302_v50 = vor.u32 %v1449_v47, %v1301_v46  ;;  %v1250_v26 = vor.u32 %v1430_v21, %v1247_v23  ;;  %v1426_v19 = vld [vmem:[#allocation8 + $0xa4] sm:$0xf0]  ;;  %v1215_v36 = vld [vmem:[#allocation8 + $0xa8] sm:$0xf0] }
  0xf6   :  { %v344_v55 = vsel %vm343_vm14, %v1511_v49, %v340_v51  ;;  %v1333_v49 = vld [vmem:[#allocation8 + $0x180] sm:$0xf]  ;;  %929 = vmatpush.bf16.msra.mxu3 %v1342_v42  ;;  %948 = vmatpush.bf16.msrb.mxu0 %v1346_v45  ;;  %v1303_v51 = vld [vmem:[#allocation8 + $0x160] sm:$0xf0]  ;;  %v1181_v46 = vld [vmem:[#allocation8 + $0x48] sm:$0xf] }
  0xf7   :  { %v359_v56 = vmul.f32 %v355_v52, %v187_v6  ;;  %v349_v57 = vsel %vm346_vm15, %v348_v54, %v344_v55  ;;  %v373_v31 = vadd.f32 %v1513_v35, %v372_v2  ;;  %v1309_v6 = vld [vmem:[#allocation8 + $0x148] sm:$0xf]  ;;  %v1306_v54 = vor.u32 %v1445_v48, %v1303_v51  ;;  %v1446_v55 = vld [vmem:[#allocation8 + $0x14c] sm:$0xf]  ;;  %v1173_v41 = vld [vmem:[#allocation8 + $0x40] sm:$0xf] }
  0xf8   :  { %v350_v58 = vmul.f32 %v349_v57, %v325_v40  ;;  %v1450_v52 = vld [vmem:[#allocation8 + $0x164] sm:$0xf0]  ;;  %v1417_v22 = vld [vmem:[#allocation8 + $0x5c] sm:$0xf0]  ;;  %v1413_v42 = vld [vmem:[#allocation8 + $0x44] sm:$0xf] }
  0xf9   :  { %365 = vadd.xlane.f32.xlu1 %v359_v56  ;;  %v1795_v61 = vsel %vm374_vm0, %v1513_v35, %v373_v31  ;;  %v1310_v40 = vor.u32 %v1450_v52, %v1309_v6  ;;  %911 = vmatpush.bf16.msra.mxu2 %v1306_v54  ;;  %v1442_v35 = vld [vmem:[#allocation8 + $0x124] sm:$0xf0]  ;;  %v1438_v31 = vld [vmem:[#allocation8 + $0x10c] sm:$0xf]  ;;  %v1174_v44 = vor.u32 %v1417_v22, %v1173_v41  ;;  %v1175_v45 = vld [vmem:[#allocation8 + $0x60] sm:$0xf0] }
  0xfa   :  { %v1130_v59 = vclamps-f32 %v350_v58, 1.0  ;;  %v1269_v58 = vld [vmem:[#allocation8 + $0x100] sm:$0xf]  ;;  %v1278_v2 = vor.u32 %v1442_v35, %v1277_v63  ;;  %v1418_v47 = vld [vmem:[#allocation8 + $0x64] sm:$0xf0]  ;;  %v1178_v51 = vor.u32 %v1413_v42, %v1175_v45 }
  0xfb   :  { %930 = vmatpush.bf16.msra.mxu3 %v1310_v40  ;;  %v1414_v6 = vld [vmem:[#allocation8 + $0x4c] sm:$0xf]  ;;  %v1182_v54 = vor.u32 %v1418_v47, %v1181_v46  ;;  %v1468_v21 = vld [vmem:[#allocation8 + $0x1f4] sm:$0xf0]  ;;  %v1464_v23 = vld [vmem:[#allocation8 + $0x1dc] sm:$0xf] }
  0xfc   :  { %v356_v17 = vadd.f32 1.0, %v1130_v59  ;;  %v1441_v59 = vld [vmem:[#allocation8 + $0x11c] sm:$0xf0]  ;;  %v1183_v52 = vld [vmem:[#allocation8 + $0x68] sm:$0xf0] }
  0xfd   :  { %v1186_v40 = vor.u32 %v1414_v6, %v1183_v52  ;;  %v1349_v30 = vld [vmem:[#allocation8 + $0x190] sm:$0xf]  ;;  %v1359_v41 = vld [vmem:[#allocation8 + $0x1b8] sm:$0xf0] }
  0xfe   :  { %v360_v62 = vmul.f32 %v356_v17, %v188_v60  ;;  %v1437_v60 = vld [vmem:[#allocation8 + $0x104] sm:$0xf]  ;;  %v1270_v17 = vor.u32 %v1441_v59, %v1269_v58  ;;  %v1860_v46 = vld [vmem:[%s1947_s3] ss:$0 sm:$0xff] }
  0xff   :  { %931 = vmatpush.bf16.msra.mxu3 %v1278_v2  ;;  %v1405_v58 = vld [vmem:[#allocation8 + $0x4] sm:$0xf]  ;;  %v1151_v2 = vld [vmem:[#allocation8 + $0x28] sm:$0xf0]  ;;  %v1317_v47 = vld [vmem:[#allocation8 + $0x150] sm:$0xf] }
 0x101   :  { %367 = vadd.xlane.f32.xlu1 %v360_v62 }
 0x15b   :  { %v362_v3 = vpop.xlane.xlu0 %361 }
 0x15c   :  { %v376_v4 = vmul.f32 %v1795_v61, %v362_v3  ;;  %v1279_v3 = vld [vmem:[#allocation8 + $0x128] sm:$0xf0] }
 0x15e   :  { %v1799_v5 = vsub.f32 %v1783_v11, %v376_v4 }
 0x160   :  { %v384_v53 = vmul.f32 %v1799_v5, %v1799_v5 }
 0x162   :  { %388 = vadd.xlane.f32.xlu2 %v384_v53  ;;  %v1282_v53 = vor.u32 %v1438_v31, %v1279_v3 }
 0x164   :  { %v364_v7 = vpop.xlane.xlu0 %363 }
 0x165   :  { %v377_v8 = vmul.f32 %v1795_v61, %v364_v7  ;;  %v1237_v7 = vld [vmem:[#allocation8 + $0xc0] sm:$0xf] }
 0x167   :  { %v1804_v9 = vsub.f32 %v358_v34, %v377_v8  ;;  %v1457_v34 = vld [vmem:[#allocation8 + $0x19c] sm:$0xf0] }
 0x168   :  { %v1334_v37 = vor.u32 %v1457_v34, %v1333_v49  ;;  %v1433_v8 = vld [vmem:[#allocation8 + $0xdc] sm:$0xf0]  ;;  %v1214_v49 = vor.u32 %v1426_v19, %v1213_v32  ;;  %v1422_v34 = vld [vmem:[#allocation8 + $0x8c] sm:$0xf]  ;;  %v1459_v32 = vld [vmem:[#allocation8 + $0x1ac] sm:$0xf0] }
 0x169   :  { %v385_v10 = vmul.f32 %v1804_v9, %v1804_v9  ;;  %v1218_v38 = vor.u32 %v1422_v34, %v1215_v36  ;;  %v1351_v34 = vld [vmem:[#allocation8 + $0x1b0] sm:$0xf0]  ;;  %v1357_v36 = vld [vmem:[#allocation8 + $0x198] sm:$0xf] }
 0x16a   :  { %891 = vmatpush.bf16.msra.mxu1 %v1334_v37 }
 0x16b   :  { %390 = vadd.xlane.f32.xlu2 %v385_v10  ;;  %v1429_v10 = vld [vmem:[#allocation8 + $0xc4] sm:$0xf] }
 0x16c   :  { %v366_v12 = vpop.xlane.xlu1 %365 }
 0x16d   :  { %v378_v13 = vmul.f32 %v1795_v61, %v366_v12 }
 0x16e   :  { %892 = vmatpush.bf16.msra.mxu1 %v1302_v50 }
 0x16f   :  { %v1809_v14 = vsub.f32 %v359_v56, %v378_v13  ;;  %v1311_v56 = vld [vmem:[#allocation8 + $0x168] sm:$0xf0]  ;;  %v1238_v13 = vor.u32 %v1433_v8, %v1237_v7 }
 0x170   :  { %v1314_v57 = vor.u32 %v1446_v55, %v1311_v56  ;;  %v1141_v56 = vld [vmem:[#allocation8] sm:$0xf] }
 0x171   :  { %v386_v11 = vmul.f32 %v1809_v14, %v1809_v14 }
 0x172   :  { %949 = vmatpush.bf16.msrb.mxu0 %v1314_v57  ;;  %893 = vmatpush.bf16.msra.mxu1 %v1270_v17  ;;  %v1409_v57 = vld [vmem:[#allocation8 + $0x1c] sm:$0xf0]  ;;  %v1149_v17 = vld [vmem:[#allocation8 + $0x8] sm:$0xf] }
 0x173   :  { %392 = vadd.xlane.f32.xlu0 %v386_v11  ;;  %v1239_v11 = vld [vmem:[#allocation8 + $0xe0] sm:$0xf0]  ;;  %v1142_v59 = vor.u32 %v1409_v57, %v1141_v56 }
 0x174   :  { %v368_v15 = vpop.xlane.xlu1 %367 }
 0x175   :  { %v379_v18 = vmul.f32 %v1795_v61, %v368_v15  ;;  %v1245_v15 = vld [vmem:[#allocation8 + $0xc8] sm:$0xf] }
 0x176   :  { %950 = vmatpush.bf16.msrb.mxu0 %v1282_v53  ;;  %894 = vmatpush.bf16.msra.mxu1 %v1238_v13  ;;  %v1467_v53 = vld [vmem:[#allocation8 + $0x1ec] sm:$0xf0]  ;;  %v1383_v13 = vld [vmem:[#allocation8 + $0x1f0] sm:$0xf0] }
 0x177   :  { %v1814_v20 = vsub.f32 %v360_v62, %v379_v18  ;;  %v1271_v62 = vld [vmem:[#allocation8 + $0x120] sm:$0xf0]  ;;  %v1242_v18 = vor.u32 %v1429_v10, %v1239_v11  ;;  %v1463_v10 = vld [vmem:[#allocation8 + $0x1d4] sm:$0xf]  ;;  %v1389_v11 = vld [vmem:[#allocation8 + $0x1d8] sm:$0xf] }
 0x178   :  { %v1274_v1 = vor.u32 %v1437_v60, %v1271_v62  ;;  %v1143_v60 = vld [vmem:[#allocation8 + $0x20] sm:$0xf0]  ;;  %v1410_v62 = vld [vmem:[#allocation8 + $0x24] sm:$0xf0]  ;;  %v1390_v28 = vor.u32 %v1468_v21, %v1389_v11  ;;  %v1889_v11 = vld [vmem:[%s1948_s4] ss:$0 sm:$0xff] }
 0x179   :  { %v387_v16 = vmul.f32 %v1814_v20, %v1814_v20  ;;  %v1146_v35 = vor.u32 %v1405_v58, %v1143_v60  ;;  %v1452_v58 = vld [vmem:[#allocation8 + $0x174] sm:$0xf0]  ;;  %v1327_v60 = vld [vmem:[#allocation8 + $0x178] sm:$0xf0]  ;;  %s1661_s4 = smov [#allocation11]  }
 0x17a   :  { %912 = vmatpush.bf16.msra.mxu2 %v1274_v1  ;;  %951 = vmatpush.bf16.msrb.mxu0 %v1250_v26  ;;  %v1406_v1 = vld [vmem:[#allocation8 + $0xc] sm:$0xf]  ;;  %s1078_s27 = sshll.u32 %s1661_s4, 4  ;;  %s1079_s27 = int_to_ptr.vmem [resolvable:$true] %s1078_s27 }
 0x17b   :  { %394 = vadd.xlane.f32.xlu1 %v387_v16  ;;  %v1434_v16 = vld [vmem:[#allocation8 + $0xe4] sm:$0xf0]  ;;  %895 = vmatpush.bf16.msra.mxu1 %v1206_v25  ;;  %v1154_v31 = vor.u32 %v1406_v1, %v1151_v2  ;;  %v1439_v1 = vld [vmem:[#allocation8 + $0x114] sm:$0xf] }
 0x17c   :  { %v1246_v24 = vor.u32 %v1434_v16, %v1245_v15  ;;  %v1386_v16 = vor.u32 %v1463_v10, %v1383_v13  ;;  %v1440_v10 = vld [vmem:[#allocation8 + $0x11c] sm:$0xf] }
 0x17d   :  { %v1295_v13 = vld [vmem:[#allocation8 + $0x138] sm:$0xf0] }
 0x17e   :  { %913 = vmatpush.bf16.msra.mxu2 %v1242_v18  ;;  %932 = vmatpush.bf16.msra.mxu3 %v1246_v24  ;;  %v1391_v24 = vld [vmem:[#allocation8 + $0x1f8] sm:$0xf0] }
 0x17f   :  { %952 = vmatpush.bf16.msrb.mxu0 %v1218_v38  ;;  %896 = vmatpush.bf16.msra.mxu1 %v1174_v44  ;;  %v1839_v29 = vor.u32 %v1464_v23, %v1391_v24  ;;  %v1460_v38 = vld [vmem:[#allocation8 + $0x1b4] sm:$0xf0]  ;;  %v1895_v23 = vor.u32 %v1440_v10, %v1295_v13  ;;  %v1157_v13 = vld [vmem:[#allocation8 + $0x10] sm:$0xf] }
 0x180   :  { %v1358_v44 = vor.u32 %v1460_v38, %v1357_v36  ;;  %v1432_v36 = vld [vmem:[#allocation8 + $0xdc] sm:$0xf] }
 0x182   :  { %914 = vmatpush.bf16.msra.mxu2 %v1210_v33  ;;  %933 = vmatpush.bf16.msra.mxu3 %v1214_v49  ;;  %v1350_v33 = vor.u32 %v1459_v32, %v1349_v30  ;;  %v1455_v49 = vld [vmem:[#allocation8 + $0x194] sm:$0xf]  ;;  %v1261_v32 = vld [vmem:[#allocation8 + $0xd8] sm:$0xf] }
 0x183   :  { %953 = vmatpush.bf16.msrb.mxu0 %v1186_v40  ;;  %897 = vmatpush.bf16.msra.mxu1 %v1142_v59  ;;  %v1325_v40 = vld [vmem:[#allocation8 + $0x158] sm:$0xf]  ;;  %v1448_v59 = vld [vmem:[#allocation8 + $0x15c] sm:$0xf] }
 0x186   :  { %915 = vmatpush.bf16.msra.mxu2 %v1178_v51  ;;  %934 = vmatpush.bf16.msra.mxu3 %v1182_v54  ;;  %v1447_v51 = vld [vmem:[#allocation8 + $0x154] sm:$0xf] }
 0x187   :  { %954 = vmatpush.bf16.msrb.mxu0 %v1154_v31  ;;  %v1319_v54 = vld [vmem:[#allocation8 + $0x170] sm:$0xf0] }
 0x188   :  { %v1322_v57 = vor.u32 %v1447_v51, %v1319_v54  ;;  %v1423_v51 = vld [vmem:[#allocation8 + $0x94] sm:$0xf] }
 0x18a   :  { %916 = vmatpush.bf16.msra.mxu2 %v1146_v35  ;;  %v1285_v35 = vld [vmem:[#allocation8 + $0x110] sm:$0xf] }
 0x18b   :  { %1023 = vmatpush.bf16.msra.mxu0 %v1839_v29 }
 0x18e   :  { %985 = vmatpush.bf16.msrb.mxu2 %v1386_v16 }
 0x1d5   :  { %v389_v0 = vpop.xlane.xlu2 %388 }
 0x1d6   :  { %v396_v4 = vmul.f32 %v389_v0, %v1795_v61  ;;  %v1150_v0 = vor.u32 %v1410_v62, %v1149_v17  ;;  %v1326_v62 = vor.u32 %v1452_v58, %v1325_v40 }
 0x1d8   :  { %v1819_v12 = vadd.f32 1e-12, %v396_v4  ;;  %v1381_v4 = vld [vmem:[#allocation8 + $0x1d0] sm:$0xf]  ;;  %935 = vmatpush.bf16.msra.mxu3 %v1150_v0 }
 0x1d9   :  { %v1382_v8 = vor.u32 %v1467_v53, %v1381_v4  ;;  %v1443_v0 = vld [vmem:[#allocation8 + $0x12c] sm:$0xf0] }
 0x1da   :  { %1514 = vrsqrt.f32 %v1819_v12  ;;  %vm410_vm2 = vweird.f32 %v1819_v12  ;;  %v1286_v31 = vor.u32 %v1443_v0, %v1285_v35  ;;  %v1415_v0 = vld [vmem:[#allocation8 + $0x54] sm:$0xf] }
 0x1db   :  { %966 = vmatpush.bf16.msrb.mxu1 %v1382_v8  ;;  %v1444_v8 = vld [vmem:[#allocation8 + $0x134] sm:$0xf0] }
 0x1dc   :  { %1004 = vmatpush.bf16.msrb.mxu3 %v1390_v28  ;;  %v1431_v28 = vld [vmem:[#allocation8 + $0xd4] sm:$0xf] }
 0x1de   :  { %v391_v37 = vpop.xlane.xlu2 %390 }
 0x1df   :  { %v397_v39 = vmul.f32 %v391_v37, %v1795_v61  ;;  %v1354_v37 = vor.u32 %v1455_v49, %v1351_v34  ;;  %967 = vmatpush.bf16.msrb.mxu1 %v1350_v33  ;;  %v1436_v34 = vld [vmem:[#allocation8 + $0xf4] sm:$0xf0] }
 0x1e0   :  { %v1823_v43 = vpop.eup %1514  ;;  %1005 = vmatpush.bf16.msrb.mxu3 %v1358_v44 }
 0x1e1   :  { %v405_v48 = vmul.f32 %v1823_v43, %v1819_v12  ;;  %v1827_v50 = vadd.f32 1e-12, %v397_v39  ;;  %vm411_vm1 = vweird.f32 %v1823_v43  ;;  %v1456_v39 = vld [vmem:[#allocation8 + $0x19c] sm:$0xf]  ;;  %986 = vmatpush.bf16.msrb.mxu2 %v1354_v37 }
 0x1e2   :  { %vm1843_vm3 = vmor %vm410_vm2, %vm411_vm1  ;;  %v1855_v45 = vor.u32 %v1456_v39, %v1359_v41  ;;  %v1263_v37 = vld [vmem:[#allocation8 + $0xf8] sm:$0xf0]  ;;  %v1262_v39 = vor.u32 %v1436_v34, %v1261_v32 }
 0x1e3   :  { %v406_v55 = vmul.f32 %v1823_v43, %v405_v48  ;;  %1516 = vrsqrt.f32 %v1827_v50  ;;  %v1451_v48 = vld [vmem:[#allocation8 + $0x16c] sm:$0xf0]  ;;  %vm420_vm5 = vweird.f32 %v1827_v50  ;;  %v1902_v41 = vor.u32 %v1432_v36, %v1263_v37 }
 0x1e4   :  { %1024 = vmatpush.bf16.msra.mxu0 %v1855_v45  ;;  %1006 = vmatpush.bf16.msrb.mxu3 %v1326_v62 }
 0x1e5   :  { %v407_v63 = vmul.f32 0.5, %v406_v55  ;;  %987 = vmatpush.bf16.msrb.mxu2 %v1322_v57  ;;  %v1231_v57 = vld [vmem:[#allocation8 + $0xb8] sm:$0xf0] }
 0x1e6   :  { %v393_v7 = vpop.xlane.xlu0 %392 }
 0x1e7   :  { %v408_v3 = vsub.f32 1.5, %v407_v63  ;;  %v398_v18 = vmul.f32 %v393_v7, %v1795_v61  ;;  %v1868_v63 = vor.u32 %v1448_v59, %v1327_v60 }
 0x1e9   :  { %v1832_v15 = vpop.eup %1516  ;;  %v409_v26 = vmul.f32 %v1823_v43, %v408_v3  ;;  %v1847_v12 = vadd.f32 1e-12, %v398_v18  ;;  %v1293_v3 = vld [vmem:[#allocation8 + $0x118] sm:$0xf]  ;;  %1025 = vmatpush.bf16.msra.mxu0 %v1868_v63 }
 0x1ea   :  { %v415_v27 = vmul.f32 %v1832_v15, %v1827_v50  ;;  %vm421_vm4 = vweird.f32 %v1832_v15  ;;  %v1287_v50 = vld [vmem:[#allocation8 + $0x130] sm:$0xf0] }
 0x1eb   :  { %1518 = vrsqrt.f32 %v1847_v12  ;;  %v413_v22 = vsel %vm1843_vm3, %v1823_v43, %v409_v26  ;;  %v1318_v43 = vor.u32 %v1451_v48, %v1317_v47  ;;  %vm1874_vm6 = vmor %vm420_vm5, %vm421_vm4  ;;  %v1290_v7 = vor.u32 %v1439_v1, %v1287_v50  ;;  %v1253_v26 = vld [vmem:[#allocation8 + $0xd0] sm:$0xf]  ;;  %v1191_v1 = vld [vmem:[#allocation8 + $0x70] sm:$0xf0] }
 0x1ec   :  { %v416_v19 = vmul.f32 %v1832_v15, %v415_v27  ;;  %v444_v55 = vmul.f32 %v413_v22, %v1799_v5  ;;  %v1435_v27 = vld [vmem:[#allocation8 + $0xec] sm:$0xf0]  ;;  %vm430_vm8 = vweird.f32 %v1847_v12  ;;  %v1420_v50 = vld [vmem:[#allocation8 + $0x74] sm:$0xf0] }
 0x1ed   :  { %968 = vmatpush.bf16.msrb.mxu1 %v1318_v43  ;;  %988 = vmatpush.bf16.msrb.mxu2 %v1290_v7  ;;  %v1254_v30 = vor.u32 %v1435_v27, %v1253_v26  ;;  %v1221_v22 = vld [vmem:[#allocation8 + $0x90] sm:$0xf]  ;;  %v1412_v26 = vld [vmem:[#allocation8 + $0x34] sm:$0xf0]  ;;  %v1408_v27 = vld [vmem:[#allocation8 + $0x1c] sm:$0xf] }
 0x1ee   :  { %v417_v42 = vmul.f32 0.5, %v416_v19  ;;  %v395_v52 = vpop.xlane.xlu1 %394  ;;  %v452_v18 = vmul.f32 %v1860_v46, %v444_v55  ;;  %1026 = vmatpush.bf16.msra.mxu0 %v1895_v23  ;;  %v1428_v55 = vld [vmem:[#allocation8 + $0xb4] sm:$0xf0] }
 0x1ef   :  { %v399_v56 = vmul.f32 %v395_v52, %v1795_v61  ;;  %v1229_v52 = vld [vmem:[#allocation8 + $0x98] sm:$0xf] }
 0x1f0   :  { %v418_v6 = vsub.f32 1.5, %v417_v42  ;;  %v460_v19 = vadd.f32 %v1889_v11, %v452_v18  ;;  %v1427_v42 = vld [vmem:[#allocation8 + $0xac] sm:$0xf0]  ;;  %v1230_v59 = vor.u32 %v1428_v55, %v1229_v52  ;;  %v1197_v61 = vld [vmem:[#allocation8 + $0x58] sm:$0xf] }
 0x1f1   :  { %v1870_v2 = vpop.eup %1518  ;;  %v1878_v5 = vadd.f32 1e-12, %v399_v56  ;;  %969 = vmatpush.bf16.msrb.mxu1 %v1286_v31  ;;  %v1222_v48 = vor.u32 %v1427_v42, %v1221_v22  ;;  %v1424_v56 = vld [vmem:[#allocation8 + $0x9c] sm:$0xf]  ;;  %v1194_v31 = vor.u32 %v1415_v0, %v1191_v1  ;;  %v1411_v18 = vld [vmem:[#allocation8 + $0x2c] sm:$0xf0] }
 0x1f2   :  { %v419_v17 = vmul.f32 %v1832_v15, %v418_v6  ;;  %v425_v53 = vmul.f32 %v1870_v2, %v1847_v12  ;;  %vm431_vm7 = vweird.f32 %v1870_v2  ;;  %v1223_v6 = vld [vmem:[#allocation8 + $0xb0] sm:$0xf0]  ;;  %1027 = vmatpush.bf16.msra.mxu0 %v1902_v41  ;;  %v1917_v60 = vor.u32 %v1424_v56, %v1231_v57  ;;  %v1189_v12 = vld [vmem:[#allocation8 + $0x50] sm:$0xf] }
 0x1f3   :  { %1520 = vrsqrt.f32 %v1878_v5  ;;  %v1226_v40 = vor.u32 %v1423_v51, %v1223_v6  ;;  %vm1913_vm9 = vmor %vm430_vm8, %vm431_vm7  ;;  %vm440_vm11 = vweird.f32 %v1878_v5 }
 0x1f4   :  { %v423_v4 = vsel %vm1874_vm6, %v1832_v15, %v419_v17  ;;  %v1294_v15 = vor.u32 %v1444_v8, %v1293_v3  ;;  %v426_v21 = vmul.f32 %v1870_v2, %v425_v53  ;;  %v1419_v17 = vld [vmem:[#allocation8 + $0x6c] sm:$0xf0]  ;;  %v1416_v3 = vld [vmem:[#allocation8 + $0x5c] sm:$0xf]  ;;  %v1198_v8 = vor.u32 %v1420_v50, %v1197_v61 }
 0x1f5   :  { %v445_v16 = vmul.f32 %v423_v4, %v1804_v9  ;;  %v1255_v9 = vld [vmem:[#allocation8 + $0xf0] sm:$0xf0]  ;;  %970 = vmatpush.bf16.msrb.mxu1 %v1254_v30  ;;  %v1190_v35 = vor.u32 %v1419_v17, %v1189_v12  ;;  %v1199_v4 = vld [vmem:[#allocation8 + $0x78] sm:$0xf0] }
 0x1f6   :  { %v427_v25 = vmul.f32 0.5, %v426_v21  ;;  %1007 = vmatpush.bf16.msrb.mxu3 %v1294_v15  ;;  %v1258_v49 = vor.u32 %v1431_v28, %v1255_v9  ;;  %1028 = vmatpush.bf16.msra.mxu0 %v1917_v60  ;;  %v1202_v10 = vor.u32 %v1416_v3, %v1199_v4  ;;  %v1159_v15 = vld [vmem:[#allocation8 + $0x30] sm:$0xf0]  ;;  %v1165_v21 = vld [vmem:[#allocation8 + $0x18] sm:$0xf]  ;;  %v1158_v9 = vor.u32 %v1411_v18, %v1157_v13 }
 0x1f7   :  { %v453_v24 = vmul.f32 %v1860_v46, %v445_v16  ;;  %v1407_v16 = vld [vmem:[#allocation8 + $0x14] sm:$0xf] }
 0x1f8   :  { %v428_v38 = vsub.f32 1.5, %v427_v25  ;;  %989 = vmatpush.bf16.msrb.mxu2 %v1258_v49  ;;  %v1162_v32 = vor.u32 %v1407_v16, %v1159_v15 }
 0x1f9   :  { %v461_v33 = vadd.f32 %v1889_v11, %v453_v24  ;;  %v1904_v44 = vpop.eup %1520  ;;  %971 = vmatpush.bf16.msrb.mxu1 %v1222_v48 }
 0x1fa   :  { %v429_v43 = vmul.f32 %v1870_v2, %v428_v38  ;;  %v435_v54 = vmul.f32 %v1904_v44, %v1878_v5  ;;  %1008 = vmatpush.bf16.msrb.mxu3 %v1262_v39  ;;  %vm441_vm10 = vweird.f32 %v1904_v44  ;;  %1029 = vmatpush.bf16.msra.mxu0 %v1202_v10 }
 0x1fb   :  { %v1472_v47 = vpack.c.bf16 %v461_v33, %v460_v19  ;;  %vm442_vm12 = vmor %vm440_vm11, %vm441_vm10  ;;  %v1166_v19 = vor.u32 %v1412_v26, %v1165_v21 }
 0x1fc   :  { %v436_v62 = vmul.f32 %v1904_v44, %v435_v54  ;;  %990 = vmatpush.bf16.msrb.mxu2 %v1226_v40  ;;  %v433_v53 = vsel %vm1913_vm9, %v1870_v2, %v429_v43  ;;  %v1167_v2 = vld [vmem:[#allocation8 + $0x38] sm:$0xf0] }
 0x1fd   :  { %1473 = vst [vmem:[#allocation2] sm:$0xff] %v1472_v47   ;;  %972 = vmatpush.bf16.msrb.mxu1 %v1190_v35  ;;  %v446_v28 = vmul.f32 %v433_v53, %v1809_v14  ;;  %v1170_v33 = vor.u32 %v1408_v27, %v1167_v2 }
 0x1fe   :  { %v437_v7 = vmul.f32 0.5, %v436_v62  ;;  %1009 = vmatpush.bf16.msrb.mxu3 %v1230_v59 }
 0x1ff   :  { %v454_v14 = vmul.f32 %v1860_v46, %v446_v28  ;;  %1030 = vmatpush.bf16.msra.mxu0 %v1170_v33 }
 0x200   :  { %v438_v24 = vsub.f32 1.5, %v437_v7  ;;  %991 = vmatpush.bf16.msrb.mxu2 %v1194_v31 }
 0x201   :  { %973 = vmatpush.bf16.msrb.mxu1 %v1158_v9  ;;  %v462_v36 = vadd.f32 %v1889_v11, %v454_v14 }
 0x202   :  { %v439_v25 = vmul.f32 %v1904_v44, %v438_v24  ;;  %1010 = vmatpush.bf16.msrb.mxu3 %v1198_v8 }
 0x204   :  { %v1403_v30 = vld [vmem:[#allocation2] sm:$0xff]  ;;  %v443_v49 = vsel %vm442_vm12, %v1904_v44, %v439_v25  ;;  %992 = vmatpush.bf16.msrb.mxu2 %v1162_v32 }
 0x205   :  { %898 = vmatmul.bf16.vlgmr.msra.gmra.mxu1 %v1403_v30  ;;  %917 = vmatmul.bf16.vlgmr.msra.gmra.mxu2 %v1403_v30  ;;  %v447_v34 = vmul.f32 %v443_v49, %v1814_v20 }
 0x206   :  { %936 = vmatmul.bf16.vlgmr.msra.gmra.mxu3 %v1403_v30  ;;  %955 = vmatmul.bf16.vlgmr.msrb.gmra.mxu0 %v1403_v30 }
 0x207   :  { %v455_v5 = vmul.f32 %v1860_v46, %v447_v34  ;;  %1011 = vmatpush.bf16.msrb.mxu3 %v1166_v19  ;;  %1480 = vmatpush.bf16.msra.mxu1 %v1839_v29  ;;  %v540_v29 = vld [vmem:[#allocation9] sm:$0xff] }
 0x208   :  { %v545_v46 = vperm.slane %v540_v29, 3  ;;  %v544_v22 = vperm.slane %v540_v29, 2  ;;  %v546_v50 = vperm.slane %v540_v29, 4  ;;  %v549_v4 = vperm.slane %v540_v29, 7 }
 0x209   :  { %v463_v37 = vadd.f32 %v1889_v11, %v455_v5  ;;  %v547_v15 = vperm.slane %v540_v29, 5  ;;  %v548_v21 = vperm.slane %v540_v29, 6 }
 0x20b   :  { %v1477_v38 = vpack.c.bf16 %v463_v37, %v462_v36  ;;  %1481 = vmatpush.bf16.msra.mxu1 %v1855_v45  ;;  %v542_v45 = vperm.slane %v540_v29, 0 }
 0x20d   :  { %1479 = vst [vmem:[#allocation2 + $0x8] sm:$0xff] %v1477_v38  }
 0x20f   :  { %1482 = vmatpush.bf16.msra.mxu1 %v1868_v63 }
 0x213   :  { %1483 = vmatpush.bf16.msra.mxu1 %v1895_v23 }
 0x214   :  { %v1404_v20 = vld [vmem:[#allocation2 + $0x8] sm:$0xff] }
 0x215   :  { %903 = vmatmul.bf16.gmra.mxu1 %v1404_v20  ;;  %922 = vmatmul.bf16.gmra.mxu2 %v1404_v20 }
 0x216   :  { %941 = vmatmul.bf16.gmra.mxu3 %v1404_v20  ;;  %960 = vmatmul.bf16.gmra.mxu0 %v1404_v20 }
 0x217   :  { %1484 = vmatpush.bf16.msra.mxu1 %v1902_v41  ;;  %v543_v41 = vperm.slane %v540_v29, 1 }
 0x21b   :  { %1485 = vmatpush.bf16.msra.mxu1 %v1917_v60 }
 0x21f   :  { %1486 = vmatpush.bf16.msra.mxu1 %v1202_v10 }
 0x223   :  { %1487 = vmatpush.bf16.msra.mxu1 %v1170_v33 }
 0x225   :  { %974 = vmatmul.bf16.vlgmr.msrb.gmra.mxu1 %v1403_v30  ;;  %993 = vmatmul.bf16.vlgmr.msrb.gmra.mxu2 %v1403_v30 }
 0x226   :  { %1012 = vmatmul.bf16.vlgmr.msrb.gmra.mxu3 %v1403_v30  ;;  %1031 = vmatmul.bf16.vlgmr.msra.gmra.mxu0 %v1403_v30 }
 0x235   :  { %979 = vmatmul.bf16.gmra.mxu1 %v1404_v20  ;;  %998 = vmatmul.bf16.gmra.mxu2 %v1404_v20 }
 0x236   :  { %1017 = vmatmul.bf16.gmra.mxu3 %v1404_v20 }
 0x245   :  { %1036 = vmatmul.bf16.vlgmr.msra.gmra.mxu1 %v1404_v20 }
 0x282   :  { %v899_v63 = vpop.f32.mrf.mxu1 }
 0x283   :  { %v900_v11 = vadd.f32 %v899_v63, %v542_v45  ;;  %v956_v23 = vpop.f32.mrf.mxu0 }
 0x284   :  { %v957_v39 = vadd.f32 %v956_v23, %v545_v46 }
 0x285   :  { %1042 = vst [vmem:[#allocation11] sm:$0xff] %v900_v11 }
 0x286   :  { %1045 = vst [vmem:[#allocation11 + $0x18] sm:$0xff] %v957_v39 }
 0x288   :  { %v918_v42 = vpop.f32.mrf.mxu2 }
 0x289   :  { %v919_v44 = vadd.f32 %v918_v42, %v543_v41  ;;  %v937_v47 = vpop.f32.mrf.mxu3 }
 0x28a   :  { %v938_v48 = vadd.f32 %v937_v47, %v544_v22  ;;  %v901_v51 = vpop.f32.mrf.mxu1 }
 0x28b   :  { %1043 = vst [vmem:[#allocation11 + $0x8] sm:$0xff] %v919_v44  ;;  %v902_v6 = vadd.f32 %v901_v51, %v542_v45  ;;  %v958_v52 = vpop.f32.mrf.mxu0 }
 0x28c   :  { %1044 = vst [vmem:[#allocation11 + $0x10] sm:$0xff] %v938_v48  ;;  %v959_v43 = vadd.f32 %v958_v52, %v545_v46 }
 0x28d   :  { %1050 = vst [vmem:[#allocation11 + $0x40] sm:$0xff] %v902_v6 }
 0x28e   :  { %1053 = vst [vmem:[#allocation11 + $0x58] sm:$0xff] %v959_v43 }
 0x290   :  { %v920_v54 = vpop.f32.mrf.mxu2 }
 0x291   :  { %v921_v40 = vadd.f32 %v920_v54, %v543_v41  ;;  %v939_v55 = vpop.f32.mrf.mxu3 }
 0x292   :  { %v940_v56 = vadd.f32 %v939_v55, %v544_v22  ;;  %v904_v57 = vpop.f32.mrf.mxu1 }
 0x293   :  { %1051 = vst [vmem:[#allocation11 + $0x48] sm:$0xff] %v921_v40  ;;  %v905_v58 = vadd.f32 %v904_v57, %v542_v45  ;;  %v961_v59 = vpop.f32.mrf.mxu0 }
 0x294   :  { %1052 = vst [vmem:[#allocation11 + $0x50] sm:$0xff] %v940_v56  ;;  %v962_v60 = vadd.f32 %v961_v59, %v545_v46 }
 0x295   :  { %1058 = vst [vmem:[#allocation11 + $0x80] sm:$0xff] %v905_v58 }
 0x296   :  { %1061 = vst [vmem:[#allocation11 + $0x98] sm:$0xff] %v962_v60 }
 0x298   :  { %v923_v12 = vpop.f32.mrf.mxu2 }
 0x299   :  { %v924_v17 = vadd.f32 %v923_v12, %v543_v41  ;;  %v942_v62 = vpop.f32.mrf.mxu3 }
 0x29a   :  { %v943_v35 = vadd.f32 %v942_v62, %v544_v22  ;;  %v906_v0 = vpop.f32.mrf.mxu1 }
 0x29b   :  { %1059 = vst [vmem:[#allocation11 + $0x88] sm:$0xff] %v924_v17  ;;  %v907_v1 = vadd.f32 %v906_v0, %v542_v45  ;;  %v963_v61 = vpop.f32.mrf.mxu0 }
 0x29c   :  { %1060 = vst [vmem:[#allocation11 + $0x90] sm:$0xff] %v943_v35  ;;  %v964_v31 = vadd.f32 %v963_v61, %v545_v46 }
 0x29d   :  { %1066 = vst [vmem:[#allocation11 + $0xc0] sm:$0xff] %v907_v1 }
 0x29e   :  { %1069 = vst [vmem:[#allocation11 + $0xd8] sm:$0xff] %v964_v31 }
 0x2a0   :  { %v925_v3 = vpop.f32.mrf.mxu2 }
 0x2a1   :  { %v926_v53 = vadd.f32 %v925_v3, %v543_v41  ;;  %v944_v7 = vpop.f32.mrf.mxu3 }
 0x2a2   :  { %v945_v8 = vadd.f32 %v944_v7, %v544_v22  ;;  %v975_v10 = vpop.f32.mrf.mxu1 }
 0x2a3   :  { %1067 = vst [vmem:[#allocation11 + $0xc8] sm:$0xff] %v926_v53  ;;  %v976_v13 = vadd.f32 %v975_v10, %v546_v50  ;;  %v1032_v18 = vpop.f32.mrf.mxu0 }
 0x2a4   :  { %1068 = vst [vmem:[#allocation11 + $0xd0] sm:$0xff] %v945_v8  ;;  %v1033_v16 = vadd.f32 %v1032_v18, %v549_v4 }
 0x2a5   :  { %1046 = vst [vmem:[#allocation11 + $0x20] sm:$0xff] %v976_v13 }
 0x2a6   :  { %1049 = vst [vmem:[#allocation11 + $0x38] sm:$0xff] %v1033_v16 }
 0x2a8   :  { %v994_v24 = vpop.f32.mrf.mxu2 }
 0x2a9   :  { %v995_v26 = vadd.f32 %v994_v24, %v547_v15  ;;  %v1013_v27 = vpop.f32.mrf.mxu3 }
 0x2aa   :  { %v1014_v28 = vadd.f32 %v1013_v27, %v548_v21  ;;  %v977_v2 = vpop.f32.mrf.mxu1 }
 0x2ab   :  { %1047 = vst [vmem:[#allocation11 + $0x28] sm:$0xff] %v995_v26  ;;  %v978_v25 = vadd.f32 %v977_v2, %v546_v50  ;;  %v1034_v30 = vpop.f32.mrf.mxu0 }
 0x2ac   :  { %1048 = vst [vmem:[#allocation11 + $0x30] sm:$0xff] %v1014_v28  ;;  %v1035_v9 = vadd.f32 %v1034_v30, %v549_v4 }
 0x2ad   :  { %1054 = vst [vmem:[#allocation11 + $0x60] sm:$0xff] %v978_v25 }
 0x2ae   :  { %1057 = vst [vmem:[#allocation11 + $0x78] sm:$0xff] %v1035_v9 }
 0x2b0   :  { %v996_v32 = vpop.f32.mrf.mxu2 }
 0x2b1   :  { %v997_v19 = vadd.f32 %v996_v32, %v547_v15  ;;  %v1015_v33 = vpop.f32.mrf.mxu3 }
 0x2b2   :  { %v1016_v49 = vadd.f32 %v1015_v33, %v548_v21  ;;  %v980_v14 = vpop.f32.mrf.mxu1 }
 0x2b3   :  { %1055 = vst [vmem:[#allocation11 + $0x68] sm:$0xff] %v997_v19  ;;  %v981_v34 = vadd.f32 %v980_v14, %v546_v50 }
 0x2b4   :  { %1056 = vst [vmem:[#allocation11 + $0x70] sm:$0xff] %v1016_v49 }
 0x2b5   :  { %1062 = vst [vmem:[#allocation11 + $0xa0] sm:$0xff] %v981_v34 }
 0x2b8   :  { %v999_v5 = vpop.f32.mrf.mxu2 }
 0x2b9   :  { %v1000_v36 = vadd.f32 %v999_v5, %v547_v15  ;;  %v1018_v37 = vpop.f32.mrf.mxu3 }
 0x2ba   :  { %v1019_v38 = vadd.f32 %v1018_v37, %v548_v21  ;;  %v982_v20 = vpop.f32.mrf.mxu1 }
 0x2bb   :  { %1063 = vst [vmem:[#allocation11 + $0xa8] sm:$0xff] %v1000_v36  ;;  %v983_v29 = vadd.f32 %v982_v20, %v546_v50 }
 0x2bc   :  { %1064 = vst [vmem:[#allocation11 + $0xb0] sm:$0xff] %v1019_v38 }
 0x2bd   :  { %1070 = vst [vmem:[#allocation11 + $0xe0] sm:$0xff] %v983_v29 }
 0x2c0   :  { %v1001_v45 = vpop.f32.mrf.mxu2 }
 0x2c1   :  { %v1002_v46 = vadd.f32 %v1001_v45, %v547_v15  ;;  %v1020_v63 = vpop.f32.mrf.mxu3 }
 0x2c2   :  { %v1021_v11 = vadd.f32 %v1020_v63, %v548_v21  ;;  %v1037_v23 = vpop.f32.mrf.mxu1 }
 0x2c3   :  { %1071 = vst [vmem:[#allocation11 + $0xe8] sm:$0xff] %v1002_v46  ;;  %v1038_v39 = vadd.f32 %v1037_v23, %v549_v4 }
 0x2c4   :  { %1072 = vst [vmem:[#allocation11 + $0xf0] sm:$0xff] %v1021_v11 }
 0x2c5   :  { %1065 = vst [vmem:[#allocation11 + $0xb8] sm:$0xff] %v1038_v39 }
 0x2ca   :  { %v1039_v41 = vpop.f32.mrf.mxu1 }
 0x2cb   :  { %v1040_v22 = vadd.f32 %v1039_v41, %v549_v4 }
 0x2cd   :  { %1073 = vst [vmem:[#allocation11 + $0xf8] sm:$0xff] %v1040_v22 }
 0x2ce   :  { %1086 = dma.vmem_to_hbm [thread:$0]  %s1079_s27, 4096, %s1081_s30, [#allocation5], %s1662_s8, %s1662_s8, %s1651_s9  }
 0x2cf   :  { %1648 = dma.done.wait [#allocation5], 4096  }
 0x2d0   :  { %1649 = vsyncadd [#allocation5], 4294963200 }
 0x2d1   :  { %1091 = vsyncpa [#allocation4], 1 }
 0x2d2   :  { %1092 = vsyncpa [#allocation7], 1 }
 0x2d3   :  { %1093 = vsyncpa [#allocation10], 1 }
 0x2d4   :  { %1094 = vsyncpa [#allocation5], 1 }

// kernel: tpu_custom_call.1
= control target key start
LH: loop header
LB: loop body
LE: loop exit
PB: predicated region body
PF: predicated region fallthrough
CT: control target
= control target key end

     0   :  { %12 = vsyncpa [#allocation4], 0  ;;  %s1944_s0 = inlined_call_operand.hbm [shape: f32[32,128], index: 0, kind: input, shape index: {}]   ;;  %s1945_s1 = inlined_call_operand.hbm [shape: bf16[128,128], index: 1, kind: input, shape index: {}]   ;;  %s1946_s2 = inlined_call_operand.vmem [shape: f32[1,128], index: 2, kind: input, shape index: {}]   ;;  %s1947_s3 = inlined_call_operand.vmem [shape: f32[1,128], index: 3, kind: input, shape index: {}]   ;;  %s1948_s4 = inlined_call_operand.vmem [shape: f32[1,128], index: 4, kind: input, shape index: {}]   ;;  %s1949_s5 = inlined_call_operand.hbm [shape: bf16[128,1024], index: 5, kind: input, shape index: {}]   ;;  %s1950_s6 = inlined_call_operand.hbm [shape: f32[1,1024], index: 6, kind: input, shape index: {}]   ;;  %s1951_s7 = inlined_call_operand.hbm [shape: f32[32,1024], index: 7, kind: output, shape index: {}]  }
   0x1   :  { %13 = vsyncpa [#allocation7], 0 }
   0x2   :  { %14 = vsyncpa [#allocation10], 0  ;;  %s33_s26 = sshll.u32 %s1945_s1, 4  ;;  %s34_s26 = int_to_ptr.hbm [resolvable:$true] %s33_s26 }
   0x3   :  { %15 = vsyncpa [#allocation5], 0  ;;  %s1650_s27 = smov [#allocation6]   ;;  %s20_s8 = sshll.u32 %s1944_s0, 4  ;;  %s21_s8 = int_to_ptr.hbm [resolvable:$true] %s20_s8 }
   0x4   :  { %s35_s28 = sshll.u32 %s1650_s27, 4  ;;  %s1651_s9 = smov 64   ;;  %s36_s28 = int_to_ptr.vmem [resolvable:$true] %s35_s28 }
   0x5   :  { %s1652_s10 = smov 4   ;;  %s1653_s11 = smov [#allocation3]  }
   0x6   :  { %41 = dma.hbm_to_vmem [thread:$0]  %s34_s26, 1024, %s36_s28, [#allocation7], %s1651_s9, %s1651_s9, %s1652_s10  }
   0x7   :  { %s22_s12 = sshll.u32 %s1653_s11, 4  ;;  %s1654_s13 = smov 128   ;;  %s23_s12 = int_to_ptr.vmem [resolvable:$true] %s22_s12 }
   0x8   :  { %s1655_s1 = smov 8   ;;  %s52_s16 = sshll.u32 %s1949_s5, 4  ;;  %s53_s16 = int_to_ptr.hbm [resolvable:$true] %s52_s16 }
   0x9   :  { %28 = dma.hbm_to_vmem [thread:$0]  %s21_s8, 512, %s23_s12, [#allocation4], %s1654_s13, %s1654_s13, %s1655_s1  }
   0xa   :  { %s1656_s17 = smov [#allocation8]   ;;  %s66_s20 = sshll.u32 %s1950_s6, 4  ;;  %s67_s20 = int_to_ptr.hbm [resolvable:$true] %s66_s20 }
   0xb   :  { %s54_s18 = sshll.u32 %s1656_s17, 4  ;;  %s1657_s21 = smov 512   ;;  %s55_s18 = int_to_ptr.vmem [resolvable:$true] %s54_s18 }
   0xc   :  { %s1658_s22 = smov 32   ;;  %s1659_s23 = smov [#allocation9]  }
   0xd   :  { %60 = dma.hbm_to_vmem [thread:$0]  %s53_s16, 8192, %s55_s18, [#allocation7], %s1657_s21, %s1657_s21, %s1658_s22  }
   0xe   :  { %s68_s24 = sshll.u32 %s1659_s23, 4  ;;  %s69_s24 = int_to_ptr.vmem [resolvable:$true] %s68_s24 }
   0xf   :  { %71 = dma.hbm_to_vmem [thread:$0]  %s67_s20, 128, %s69_s24, [#allocation10]  }
  0x10   :  { %1642 = dma.done.wait [#allocation4], 512  }
  0x11   :  { %1643 = vsyncadd [#allocation4], 4294966784 }
  0x12   :  { %1644 = dma.done.wait [#allocation7], 9216  }
  0x13   :  { %1645 = vsyncadd [#allocation7], 4294958080 }
  0x14   :  { %1646 = dma.done.wait [#allocation10], 128  }
  0x15   :  { %1647 = vsyncadd [#allocation10], 4294967168  ;;  %v1402_v0 = vld [vmem:[#allocation6 + $0x38] sm:$0xff]  ;;  %v1401_v1 = vld [vmem:[#allocation6 + $0x30] sm:$0xff]  ;;  %s1080_s30 = sshll.u32 %s1951_s7, 4  ;;  %s1662_s8 = smov 1024   ;;  %s1081_s30 = int_to_ptr.hbm [resolvable:$true] %s1080_s30 }
  0x16   :  { %166 = vmatpush.bf16.msra.mxu0 %v1402_v0  ;;  %v1400_v2 = vld [vmem:[#allocation6 + $0x28] sm:$0xff]  ;;  %v1399_v3 = vld [vmem:[#allocation6 + $0x20] sm:$0xff]  ;;  %v1398_v4 = vld [vmem:[#allocation6 + $0x18] sm:$0xff] }
  0x17   :  { %v1397_v5 = vld [vmem:[#allocation6 + $0x10] sm:$0xff]  ;;  %v1396_v6 = vld [vmem:[#allocation6 + $0x8] sm:$0xff]  ;;  %v1395_v7 = vld [vmem:[#allocation6] sm:$0xff] }
  0x18   :  { %v92_v8 = vld [vmem:[#allocation3] sm:$0xff]  ;;  %v93_v9 = vld [vmem:[#allocation3 + $0x8] sm:$0xff]  ;;  %v94_v11 = vld [vmem:[#allocation3 + $0x10] sm:$0xff] }
  0x19   :  { %v96_v10 = vpack.c.bf16 %v93_v9, %v92_v8  ;;  %v95_v12 = vld [vmem:[#allocation3 + $0x18] sm:$0xff]  ;;  %v1501_v14 = vld [vmem:[%s1946_s2] ss:$0 sm:$0xff] }
  0x1a   :  { %167 = vmatpush.bf16.msra.mxu0 %v1401_v1  ;;  %v97_v13 = vpack.c.bf16 %v95_v12, %v94_v11 }
  0x1e   :  { %168 = vmatpush.bf16.msra.mxu0 %v1400_v2 }
  0x22   :  { %169 = vmatpush.bf16.msra.mxu0 %v1399_v3 }
  0x26   :  { %170 = vmatpush.bf16.msra.mxu0 %v1398_v4 }
  0x2a   :  { %171 = vmatpush.bf16.msra.mxu0 %v1397_v5 }
  0x2e   :  { %172 = vmatpush.bf16.msra.mxu0 %v1396_v6 }
  0x32   :  { %173 = vmatpush.bf16.msra.mxu0 %v1395_v7 }
  0x35   :  { %174 = vmatmul.bf16.vlgmr.msra.gmra.mxu0 %v96_v10 }
  0x45   :  { %179 = vmatmul.bf16.gmra.mxu0 %v97_v13 }
  0xb2   :  { %v175_v15 = vpop.f32.mrf.mxu0 }
  0xb3   :  { %v1720_v16 = vadd.f32 %v1501_v14, %v175_v15 }
  0xb5   :  { %v1723_v17 = vmul.f32 0.70710677, %v1720_v16 }
  0xb7   :  { %v193_v18 = vmul.f32 %v1723_v17, %v1723_v17 }
  0xb9   :  { %v194_v19 = vmin.f32 %v193_v18, 16.0 }
  0xba   :  { %v177_v20 = vpop.f32.mrf.mxu0 }
  0xbb   :  { %v195_v21 = vmul.f32 2.1237322e-06, %v194_v19  ;;  %v1727_v22 = vadd.f32 %v1501_v14, %v177_v20  ;;  %v206_v23 = vmul.f32 3.8918573e-05, %v194_v19 }
  0xbd   :  { %v196_v24 = vadd.f32 0.00028619796, %v195_v21  ;;  %v1730_v25 = vmul.f32 0.70710677, %v1727_v22  ;;  %v207_v26 = vadd.f32 0.001143296, %v206_v23 }
  0xbf   :  { %v197_v27 = vmul.f32 %v196_v24, %v194_v19  ;;  %v233_v28 = vmul.f32 %v1730_v25, %v1730_v25  ;;  %v208_v29 = vmul.f32 %v207_v26, %v194_v19 }
  0xc1   :  { %v198_v30 = vadd.f32 0.0036580483, %v197_v27  ;;  %v1734_v31 = vmin.f32 %v233_v28, 16.0  ;;  %v209_v33 = vadd.f32 0.014752088, %v208_v29 }
  0xc2   :  { %v180_v32 = vpop.f32.mrf.mxu0 }
  0xc3   :  { %v235_v34 = vmul.f32 2.1237322e-06, %v1734_v31  ;;  %v1737_v35 = vadd.f32 %v1501_v14, %v180_v32  ;;  %v246_v36 = vmul.f32 3.8918573e-05, %v1734_v31  ;;  %v210_v37 = vmul.f32 %v209_v33, %v194_v19 }
  0xc4   :  { %v199_v38 = vmul.f32 %v198_v30, %v194_v19 }
  0xc5   :  { %v236_v39 = vadd.f32 0.00028619796, %v235_v34  ;;  %v1741_v40 = vmul.f32 0.70710677, %v1737_v35  ;;  %v211_v41 = vadd.f32 0.112945676, %v210_v37 }
  0xc6   :  { %v247_v42 = vadd.f32 0.001143296, %v246_v36  ;;  %v200_v47 = vadd.f32 0.05243302, %v199_v38 }
  0xc7   :  { %v237_v43 = vmul.f32 %v236_v39, %v1734_v31  ;;  %v273_v44 = vmul.f32 %v1741_v40, %v1741_v40  ;;  %v212_v45 = vmul.f32 %v211_v41, %v194_v19 }
  0xc8   :  { %v248_v46 = vmul.f32 %v247_v42, %v1734_v31  ;;  %v201_v58 = vmul.f32 %v200_v47, %v194_v19 }
  0xc9   :  { %v238_v48 = vadd.f32 0.0036580483, %v237_v43  ;;  %v1747_v49 = vmin.f32 %v273_v44, 16.0  ;;  %v213_v51 = vadd.f32 0.4994258, %v212_v45 }
  0xca   :  { %v182_v50 = vpop.f32.mrf.mxu0  ;;  %v249_v52 = vadd.f32 0.014752088, %v248_v46  ;;  %v202_v3 = vadd.f32 0.18741608, %v201_v58 }
  0xcb   :  { %v1749_v53 = vadd.f32 %v1501_v14, %v182_v50  ;;  %v275_v54 = vmul.f32 2.1237322e-06, %v1747_v49  ;;  %v214_v55 = vmul.f32 %v213_v51, %v194_v19  ;;  %v286_v57 = vmul.f32 3.8918573e-05, %v1747_v49 }
  0xcc   :  { %v250_v56 = vmul.f32 %v249_v52, %v1734_v31  ;;  %v239_v59 = vmul.f32 %v238_v48, %v1734_v31  ;;  %v203_v13 = vmul.f32 %v202_v3, %v194_v19 }
  0xcd   :  { %v276_v60 = vadd.f32 0.00028619796, %v275_v54  ;;  %v1756_v61 = vmul.f32 0.70710677, %v1749_v53  ;;  %v215_v62 = vadd.f32 1.0, %v214_v55 }
  0xce   :  { %v251_v63 = vadd.f32 0.112945676, %v250_v56  ;;  %v287_v0 = vadd.f32 0.001143296, %v286_v57  ;;  %v240_v5 = vadd.f32 0.05243302, %v239_v59 }
  0xcf   :  { %v277_v1 = vmul.f32 %v276_v60, %v1747_v49  ;;  %v313_v2 = vmul.f32 %v1756_v61, %v1756_v61  ;;  %1504 = vrcp.f32 %v215_v62  ;;  %v204_v19 = vadd.f32 1.1283791, %v203_v13 }
  0xd0   :  { %v252_v4 = vmul.f32 %v251_v63, %v1734_v31  ;;  %v288_v7 = vmul.f32 %v287_v0, %v1747_v49  ;;  %v241_v18 = vmul.f32 %v240_v5, %v1734_v31  ;;  %v227_v34 = vand.u32 2147483648, %v215_v62 }
  0xd1   :  { %v1762_v6 = vmin.f32 %v313_v2, 16.0  ;;  %v278_v8 = vadd.f32 0.0036580483, %v277_v1  ;;  %v225_v38 = vand.u32 2147483647, %v215_v62  ;;  %vm221_vm1 = vweird.f32 %v215_v62 }
  0xd2   :  { %v253_v9 = vadd.f32 0.4994258, %v252_v4  ;;  %v289_v11 = vadd.f32 0.014752088, %v288_v7  ;;  %v242_v33 = vadd.f32 0.18741608, %v241_v18  ;;  %v205_v46 = vmul.f32 %v204_v19, %v1723_v17 }
  0xd3   :  { %v315_v10 = vmul.f32 2.1237322e-06, %v1762_v6  ;;  %v326_v12 = vmul.f32 3.8918573e-05, %v1762_v6  ;;  %v279_v27 = vmul.f32 %v278_v8, %v1747_v49  ;;  %v228_v47 = vor.u32 1.1754944e-38, %v227_v34 }
  0xd4   :  { %v254_v14 = vmul.f32 %v253_v9, %v1734_v31  ;;  %v290_v21 = vmul.f32 %v289_v11, %v1747_v49  ;;  %v243_v51 = vmul.f32 %v242_v33, %v1734_v31  ;;  %vm226_vm3 = vcmp.eq.f32.partialorder %v225_v38, 8.507059e+37 }
  0xd5   :  { %v1505_v15 = vpop.eup %1504  ;;  %v316_v20 = vadd.f32 0.00028619796, %v315_v10  ;;  %v327_v23 = vadd.f32 0.001143296, %v326_v12  ;;  %v280_v41 = vadd.f32 0.05243302, %v279_v27 }
  0xd6   :  { %v217_v24 = vmul.f32 %v1505_v15, %v215_v62  ;;  %v255_v26 = vadd.f32 1.0, %v254_v14  ;;  %v291_v28 = vadd.f32 0.112945676, %v290_v21  ;;  %vm222_vm0 = vweird.f32 %v1505_v15 }
  0xd7   :  { %v328_v29 = vmul.f32 %v327_v23, %v1762_v6  ;;  %v317_v30 = vmul.f32 %v316_v20, %v1762_v6  ;;  %vm223_vm2 = vmor %vm221_vm1, %vm222_vm0  ;;  %v281_v55 = vmul.f32 %v280_v41, %v1747_v49  ;;  %v244_v63 = vadd.f32 1.1283791, %v243_v51 }
  0xd8   :  { %v218_v32 = vsub.f32 1.0, %v217_v24  ;;  %1506 = vrcp.f32 %v255_v26  ;;  %v292_v36 = vmul.f32 %v291_v28, %v1747_v49  ;;  %v267_v1 = vand.u32 2147483648, %v255_v26 }
  0xd9   :  { %v329_v39 = vadd.f32 0.014752088, %v328_v29  ;;  %v318_v43 = vadd.f32 0.0036580483, %v317_v30  ;;  %v265_v31 = vand.u32 2147483647, %v255_v26  ;;  %vm261_vm5 = vweird.f32 %v255_v26 }
  0xda   :  { %v219_v37 = vmul.f32 %v1505_v15, %v218_v32  ;;  %v293_v42 = vadd.f32 0.4994258, %v292_v36  ;;  %v185_v4 = vmul.f32 0.5, %v1720_v16  ;;  %v282_v5 = vadd.f32 0.18741608, %v281_v55 }
  0xdb   :  { %v330_v45 = vmul.f32 %v329_v39, %v1762_v6  ;;  %v319_v58 = vmul.f32 %v318_v43, %v1762_v6  ;;  %v268_v12 = vor.u32 1.1754944e-38, %v267_v1  ;;  %v245_v13 = vmul.f32 %v244_v63, %v1730_v25 }
  0xdc   :  { %v220_v44 = vadd.f32 %v1505_v15, %v219_v37  ;;  %v294_v48 = vmul.f32 %v293_v42, %v1747_v49  ;;  %vm266_vm7 = vcmp.eq.f32.partialorder %v265_v31, 8.507059e+37  ;;  %v283_v20 = vmul.f32 %v282_v5, %v1747_v49 }
  0xdd   :  { %v331_v54 = vadd.f32 0.112945676, %v330_v45  ;;  %v320_v7 = vadd.f32 0.05243302, %v319_v58  ;;  %v186_v28 = vmul.f32 0.5, %v1727_v22  ;;  %v1660_v63 = vmov 128.0  }
  0xde   :  { %v1507_v50 = vpop.eup %1506  ;;  %v224_v52 = vsel %vm223_vm2, %v1505_v15, %v220_v44  ;;  %v295_v60 = vadd.f32 1.0, %v294_v48  ;;  %v284_v29 = vadd.f32 1.1283791, %v283_v20 }
  0xdf   :  { %v229_v56 = vsel %vm226_vm3, %v228_v47, %v224_v52  ;;  %v257_v57 = vmul.f32 %v1507_v50, %v255_v26  ;;  %v332_v17 = vmul.f32 %v331_v54, %v1762_v6  ;;  %vm262_vm4 = vweird.f32 %v1507_v50 }
  0xe0   :  { %v230_v59 = vmul.f32 %v229_v56, %v205_v46  ;;  %1508 = vrcp.f32 %v295_v60  ;;  %vm263_vm6 = vmor %vm261_vm5, %vm262_vm4  ;;  %v321_v16 = vmul.f32 %v320_v7, %v1762_v6  ;;  %v307_v30 = vand.u32 2147483648, %v295_v60 }
  0xe1   :  { %v258_v62 = vsub.f32 1.0, %v257_v57  ;;  %v333_v3 = vadd.f32 0.4994258, %v332_v17  ;;  %v305_v33 = vand.u32 2147483647, %v295_v60  ;;  %vm301_vm9 = vweird.f32 %v295_v60 }
  0xe2   :  { %v1127_v0 = vclamps-f32 %v230_v59, 1.0  ;;  %v322_v25 = vadd.f32 0.18741608, %v321_v16  ;;  %v308_v38 = vor.u32 1.1754944e-38, %v307_v30  ;;  %v285_v41 = vmul.f32 %v284_v29, %v1741_v40  ;;  %v1466_v29 = vld [vmem:[#allocation8 + $0x1e4] sm:$0xf0] }
  0xe3   :  { %v259_v2 = vmul.f32 %v1507_v50, %v258_v62  ;;  %v334_v10 = vmul.f32 %v333_v3, %v1762_v6  ;;  %vm306_vm11 = vcmp.eq.f32.partialorder %v305_v33, 8.507059e+37 }
  0xe4   :  { %v353_v8 = vadd.f32 1.0, %v1127_v0  ;;  %v323_v37 = vmul.f32 %v322_v25, %v1762_v6  ;;  %v187_v6 = vmul.f32 0.5, %v1737_v35 }
  0xe5   :  { %v260_v9 = vadd.f32 %v1507_v50, %v259_v2  ;;  %v335_v15 = vadd.f32 1.0, %v334_v10 }
  0xe6   :  { %v1783_v11 = vmul.f32 %v353_v8, %v185_v4  ;;  %v1509_v18 = vpop.eup %1508  ;;  %v324_v46 = vadd.f32 1.1283791, %v323_v37 }
  0xe7   :  { %v264_v14 = vsel %vm263_vm6, %v1507_v50, %v260_v9  ;;  %v297_v24 = vmul.f32 %v1509_v18, %v295_v60  ;;  %1510 = vrcp.f32 %v335_v15  ;;  %vm302_vm8 = vweird.f32 %v1509_v18 }
  0xe8   :  { %361 = vadd.xlane.f32.xlu0 %v1783_v11  ;;  %v269_v21 = vsel %vm266_vm7, %v268_v12, %v264_v14  ;;  %vm303_vm10 = vmor %vm301_vm9, %vm302_vm8  ;;  %v347_v45 = vand.u32 2147483648, %v335_v15  ;;  %v345_v48 = vand.u32 2147483647, %v335_v15  ;;  %vm341_vm13 = vweird.f32 %v335_v15 }
  0xe9   :  { %v270_v23 = vmul.f32 %v269_v21, %v245_v13  ;;  %v298_v27 = vsub.f32 1.0, %v297_v24  ;;  %v325_v40 = vmul.f32 %v324_v46, %v1756_v61  ;;  %v188_v60 = vmul.f32 0.5, %v1749_v53  ;;  %v1365_v21 = vld [vmem:[#allocation8 + $0x1c0] sm:$0xf]  ;;  %v1461_v24 = vld [vmem:[#allocation8 + $0x1c4] sm:$0xf] }
  0xea   :  { %v348_v54 = vor.u32 1.1754944e-38, %v347_v45  ;;  %vm346_vm15 = vcmp.eq.f32.partialorder %v345_v48, 8.507059e+37  ;;  %1512 = vrcp.f32 %v1660_v63  ;;  %v1301_v46 = vld [vmem:[#allocation8 + $0x140] sm:$0xf]  ;;  %v1445_v48 = vld [vmem:[#allocation8 + $0x144] sm:$0xf] }
  0xeb   :  { %v1128_v26 = vclamps-f32 %v270_v23, 1.0  ;;  %v299_v19 = vmul.f32 %v1509_v18, %v298_v27  ;;  %v1465_v23 = vld [vmem:[#allocation8 + $0x1dc] sm:$0xf0]  ;;  %v1367_v27 = vld [vmem:[#allocation8 + $0x1e0] sm:$0xf0] }
  0xec   :  { %v1370_v25 = vor.u32 %v1461_v24, %v1367_v27  ;;  %v1277_v63 = vld [vmem:[#allocation8 + $0x108] sm:$0xf]  ;;  %v1205_v27 = vld [vmem:[#allocation8 + $0x80] sm:$0xf] }
  0xed   :  { %v354_v32 = vadd.f32 1.0, %v1128_v26  ;;  %v1511_v49 = vpop.eup %1510  ;;  %v300_v36 = vadd.f32 %v1509_v18, %v299_v19  ;;  %v1366_v26 = vor.u32 %v1465_v23, %v1365_v21  ;;  %v1375_v19 = vld [vmem:[#allocation8 + $0x1e8] sm:$0xf0] }
  0xee   :  { %v337_v39 = vmul.f32 %v1511_v49, %v335_v15  ;;  %vm342_vm12 = vweird.f32 %v1511_v49  ;;  %909 = vmatpush.bf16.msra.mxu2 %v1370_v25  ;;  %v1430_v21 = vld [vmem:[#allocation8 + $0xcc] sm:$0xf] }
  0xef   :  { %v358_v34 = vmul.f32 %v354_v32, %v186_v28  ;;  %v304_v22 = vsel %vm303_vm10, %v1509_v18, %v300_v36  ;;  %vm343_vm14 = vmor %vm341_vm13, %vm342_vm12  ;;  %v1373_v28 = vld [vmem:[#allocation8 + $0x1c8] sm:$0xf]  ;;  %v1462_v32 = vld [vmem:[#allocation8 + $0x1cc] sm:$0xf]  ;;  %890 = vmatpush.bf16.msra.mxu1 %v1366_v26 }
  0xf0   :  { %v309_v42 = vsel %vm306_vm11, %v308_v38, %v304_v22  ;;  %v338_v43 = vsub.f32 1.0, %v337_v39  ;;  %v1513_v35 = vpop.eup %1512  ;;  %v1374_v30 = vor.u32 %v1466_v29, %v1373_v28  ;;  %v1378_v33 = vor.u32 %v1462_v32, %v1375_v19  ;;  %v1453_v36 = vld [vmem:[#allocation8 + $0x184] sm:$0xf]  ;;  %v1341_v39 = vld [vmem:[#allocation8 + $0x188] sm:$0xf] }
  0xf1   :  { %363 = vadd.xlane.f32.xlu0 %v358_v34  ;;  %v310_v44 = vmul.f32 %v309_v42, %v285_v41  ;;  %v370_v0 = vmul.f32 128.0, %v1513_v35  ;;  %vm374_vm0 = vweird.f32 %v1513_v35  ;;  %v1335_v38 = vld [vmem:[#allocation8 + $0x1a0] sm:$0xf0]  ;;  %v1458_v41 = vld [vmem:[#allocation8 + $0x1a4] sm:$0xf0] }
  0xf2   :  { %v339_v47 = vmul.f32 %v1511_v49, %v338_v43  ;;  %928 = vmatpush.bf16.msra.mxu3 %v1374_v30  ;;  %947 = vmatpush.bf16.msrb.mxu0 %v1378_v33  ;;  %v1338_v22 = vor.u32 %v1453_v36, %v1335_v38  ;;  %v1342_v42 = vor.u32 %v1458_v41, %v1341_v39  ;;  %v1454_v43 = vld [vmem:[#allocation8 + $0x18c] sm:$0xf]  ;;  %v1425_v28 = vld [vmem:[#allocation8 + $0x9c] sm:$0xf0]  ;;  %v1421_v29 = vld [vmem:[#allocation8 + $0x84] sm:$0xf] }
  0xf3   :  { %v1129_v50 = vclamps-f32 %v310_v44, 1.0  ;;  %v371_v1 = vsub.f32 1.0, %v370_v0  ;;  %v1343_v44 = vld [vmem:[#allocation8 + $0x1a8] sm:$0xf0]  ;;  %v1206_v25 = vor.u32 %v1425_v28, %v1205_v27  ;;  %v1207_v30 = vld [vmem:[#allocation8 + $0xa0] sm:$0xf0] }
  0xf4   :  { %v340_v51 = vadd.f32 %v1511_v49, %v339_v47  ;;  %v1346_v45 = vor.u32 %v1454_v43, %v1343_v44  ;;  %910 = vmatpush.bf16.msra.mxu2 %v1338_v22  ;;  %v1449_v47 = vld [vmem:[#allocation8 + $0x15c] sm:$0xf0]  ;;  %v1247_v23 = vld [vmem:[#allocation8 + $0xe8] sm:$0xf0]  ;;  %v1213_v32 = vld [vmem:[#allocation8 + $0x88] sm:$0xf]  ;;  %v1210_v33 = vor.u32 %v1421_v29, %v1207_v30 }
  0xf5   :  { %v355_v52 = vadd.f32 1.0, %v1129_v50  ;;  %v372_v2 = vmul.f32 %v1513_v35, %v371_v1  ;;  %v1302_v50 = vor.u32 %v1449_v47, %v1301_v46  ;;  %v1250_v26 = vor.u32 %v1430_v21, %v1247_v23  ;;  %v1426_v19 = vld [vmem:[#allocation8 + $0xa4] sm:$0xf0]  ;;  %v1215_v36 = vld [vmem:[#allocation8 + $0xa8] sm:$0xf0] }
  0xf6   :  { %v344_v55 = vsel %vm343_vm14, %v1511_v49, %v340_v51  ;;  %v1333_v49 = vld [vmem:[#allocation8 + $0x180] sm:$0xf]  ;;  %929 = vmatpush.bf16.msra.mxu3 %v1342_v42  ;;  %948 = vmatpush.bf16.msrb.mxu0 %v1346_v45  ;;  %v1303_v51 = vld [vmem:[#allocation8 + $0x160] sm:$0xf0]  ;;  %v1181_v46 = vld [vmem:[#allocation8 + $0x48] sm:$0xf] }
  0xf7   :  { %v359_v56 = vmul.f32 %v355_v52, %v187_v6  ;;  %v349_v57 = vsel %vm346_vm15, %v348_v54, %v344_v55  ;;  %v373_v31 = vadd.f32 %v1513_v35, %v372_v2  ;;  %v1309_v6 = vld [vmem:[#allocation8 + $0x148] sm:$0xf]  ;;  %v1306_v54 = vor.u32 %v1445_v48, %v1303_v51  ;;  %v1446_v55 = vld [vmem:[#allocation8 + $0x14c] sm:$0xf]  ;;  %v1173_v41 = vld [vmem:[#allocation8 + $0x40] sm:$0xf] }
  0xf8   :  { %v350_v58 = vmul.f32 %v349_v57, %v325_v40  ;;  %v1450_v52 = vld [vmem:[#allocation8 + $0x164] sm:$0xf0]  ;;  %v1417_v22 = vld [vmem:[#allocation8 + $0x5c] sm:$0xf0]  ;;  %v1413_v42 = vld [vmem:[#allocation8 + $0x44] sm:$0xf] }
  0xf9   :  { %365 = vadd.xlane.f32.xlu1 %v359_v56  ;;  %v1795_v61 = vsel %vm374_vm0, %v1513_v35, %v373_v31  ;;  %v1310_v40 = vor.u32 %v1450_v52, %v1309_v6  ;;  %911 = vmatpush.bf16.msra.mxu2 %v1306_v54  ;;  %v1442_v35 = vld [vmem:[#allocation8 + $0x124] sm:$0xf0]  ;;  %v1438_v31 = vld [vmem:[#allocation8 + $0x10c] sm:$0xf]  ;;  %v1174_v44 = vor.u32 %v1417_v22, %v1173_v41  ;;  %v1175_v45 = vld [vmem:[#allocation8 + $0x60] sm:$0xf0] }
  0xfa   :  { %v1130_v59 = vclamps-f32 %v350_v58, 1.0  ;;  %v1269_v58 = vld [vmem:[#allocation8 + $0x100] sm:$0xf]  ;;  %v1278_v2 = vor.u32 %v1442_v35, %v1277_v63  ;;  %v1418_v47 = vld [vmem:[#allocation8 + $0x64] sm:$0xf0]  ;;  %v1178_v51 = vor.u32 %v1413_v42, %v1175_v45 }
  0xfb   :  { %930 = vmatpush.bf16.msra.mxu3 %v1310_v40  ;;  %v1414_v6 = vld [vmem:[#allocation8 + $0x4c] sm:$0xf]  ;;  %v1182_v54 = vor.u32 %v1418_v47, %v1181_v46  ;;  %v1468_v21 = vld [vmem:[#allocation8 + $0x1f4] sm:$0xf0]  ;;  %v1464_v23 = vld [vmem:[#allocation8 + $0x1dc] sm:$0xf] }
  0xfc   :  { %v356_v17 = vadd.f32 1.0, %v1130_v59  ;;  %v1441_v59 = vld [vmem:[#allocation8 + $0x11c] sm:$0xf0]  ;;  %v1183_v52 = vld [vmem:[#allocation8 + $0x68] sm:$0xf0] }
  0xfd   :  { %v1186_v40 = vor.u32 %v1414_v6, %v1183_v52  ;;  %v1349_v30 = vld [vmem:[#allocation8 + $0x190] sm:$0xf]  ;;  %v1359_v41 = vld [vmem:[#allocation8 + $0x1b8] sm:$0xf0] }
  0xfe   :  { %v360_v62 = vmul.f32 %v356_v17, %v188_v60  ;;  %v1437_v60 = vld [vmem:[#allocation8 + $0x104] sm:$0xf]  ;;  %v1270_v17 = vor.u32 %v1441_v59, %v1269_v58  ;;  %v1860_v46 = vld [vmem:[%s1947_s3] ss:$0 sm:$0xff] }
  0xff   :  { %931 = vmatpush.bf16.msra.mxu3 %v1278_v2  ;;  %v1405_v58 = vld [vmem:[#allocation8 + $0x4] sm:$0xf]  ;;  %v1151_v2 = vld [vmem:[#allocation8 + $0x28] sm:$0xf0]  ;;  %v1317_v47 = vld [vmem:[#allocation8 + $0x150] sm:$0xf] }
 0x101   :  { %367 = vadd.xlane.f32.xlu1 %v360_v62 }
 0x15b   :  { %v362_v3 = vpop.xlane.xlu0 %361 }
 0x15c   :  { %v376_v4 = vmul.f32 %v1795_v61, %v362_v3  ;;  %v1279_v3 = vld [vmem:[#allocation8 + $0x128] sm:$0xf0] }
 0x15e   :  { %v1799_v5 = vsub.f32 %v1783_v11, %v376_v4 }
 0x160   :  { %v384_v53 = vmul.f32 %v1799_v5, %v1799_v5 }
 0x162   :  { %388 = vadd.xlane.f32.xlu2 %v384_v53  ;;  %v1282_v53 = vor.u32 %v1438_v31, %v1279_v3 }
 0x164   :  { %v364_v7 = vpop.xlane.xlu0 %363 }
 0x165   :  { %v377_v8 = vmul.f32 %v1795_v61, %v364_v7  ;;  %v1237_v7 = vld [vmem:[#allocation8 + $0xc0] sm:$0xf] }
 0x167   :  { %v1804_v9 = vsub.f32 %v358_v34, %v377_v8  ;;  %v1457_v34 = vld [vmem:[#allocation8 + $0x19c] sm:$0xf0] }
 0x168   :  { %v1334_v37 = vor.u32 %v1457_v34, %v1333_v49  ;;  %v1433_v8 = vld [vmem:[#allocation8 + $0xdc] sm:$0xf0]  ;;  %v1214_v49 = vor.u32 %v1426_v19, %v1213_v32  ;;  %v1422_v34 = vld [vmem:[#allocation8 + $0x8c] sm:$0xf]  ;;  %v1459_v32 = vld [vmem:[#allocation8 + $0x1ac] sm:$0xf0] }
 0x169   :  { %v385_v10 = vmul.f32 %v1804_v9, %v1804_v9  ;;  %v1218_v38 = vor.u32 %v1422_v34, %v1215_v36  ;;  %v1351_v34 = vld [vmem:[#allocation8 + $0x1b0] sm:$0xf0]  ;;  %v1357_v36 = vld [vmem:[#allocation8 + $0x198] sm:$0xf] }
 0x16a   :  { %891 = vmatpush.bf16.msra.mxu1 %v1334_v37 }
 0x16b   :  { %390 = vadd.xlane.f32.xlu2 %v385_v10  ;;  %v1429_v10 = vld [vmem:[#allocation8 + $0xc4] sm:$0xf] }
 0x16c   :  { %v366_v12 = vpop.xlane.xlu1 %365 }
 0x16d   :  { %v378_v13 = vmul.f32 %v1795_v61, %v366_v12 }
 0x16e   :  { %892 = vmatpush.bf16.msra.mxu1 %v1302_v50 }
 0x16f   :  { %v1809_v14 = vsub.f32 %v359_v56, %v378_v13  ;;  %v1311_v56 = vld [vmem:[#allocation8 + $0x168] sm:$0xf0]  ;;  %v1238_v13 = vor.u32 %v1433_v8, %v1237_v7 }
 0x170   :  { %v1314_v57 = vor.u32 %v1446_v55, %v1311_v56  ;;  %v1141_v56 = vld [vmem:[#allocation8] sm:$0xf] }
 0x171   :  { %v386_v11 = vmul.f32 %v1809_v14, %v1809_v14 }
 0x172   :  { %949 = vmatpush.bf16.msrb.mxu0 %v1314_v57  ;;  %893 = vmatpush.bf16.msra.mxu1 %v1270_v17  ;;  %v1409_v57 = vld [vmem:[#allocation8 + $0x1c] sm:$0xf0]  ;;  %v1149_v17 = vld [vmem:[#allocation8 + $0x8] sm:$0xf] }
 0x173   :  { %392 = vadd.xlane.f32.xlu0 %v386_v11  ;;  %v1239_v11 = vld [vmem:[#allocation8 + $0xe0] sm:$0xf0]  ;;  %v1142_v59 = vor.u32 %v1409_v57, %v1141_v56 }
 0x174   :  { %v368_v15 = vpop.xlane.xlu1 %367 }
 0x175   :  { %v379_v18 = vmul.f32 %v1795_v61, %v368_v15  ;;  %v1245_v15 = vld [vmem:[#allocation8 + $0xc8] sm:$0xf] }
 0x176   :  { %950 = vmatpush.bf16.msrb.mxu0 %v1282_v53  ;;  %894 = vmatpush.bf16.msra.mxu1 %v1238_v13  ;;  %v1467_v53 = vld [vmem:[#allocation8 + $0x1ec] sm:$0xf0]  ;;  %v1383_v13 = vld [vmem:[#allocation8 + $0x1f0] sm:$0xf0] }
 0x177   :  { %v1814_v20 = vsub.f32 %v360_v62, %v379_v18  ;;  %v1271_v62 = vld [vmem:[#allocation8 + $0x120] sm:$0xf0]  ;;  %v1242_v18 = vor.u32 %v1429_v10, %v1239_v11  ;;  %v1463_v10 = vld [vmem:[#allocation8 + $0x1d4] sm:$0xf]  ;;  %v1389_v11 = vld [vmem:[#allocation8 + $0x1d8] sm:$0xf] }
 0x178   :  { %v1274_v1 = vor.u32 %v1437_v60, %v1271_v62  ;;  %v1143_v60 = vld [vmem:[#allocation8 + $0x20] sm:$0xf0]  ;;  %v1410_v62 = vld [vmem:[#allocation8 + $0x24] sm:$0xf0]  ;;  %v1390_v28 = vor.u32 %v1468_v21, %v1389_v11  ;;  %v1889_v11 = vld [vmem:[%s1948_s4] ss:$0 sm:$0xff] }
 0x179   :  { %v387_v16 = vmul.f32 %v1814_v20, %v1814_v20  ;;  %v1146_v35 = vor.u32 %v1405_v58, %v1143_v60  ;;  %v1452_v58 = vld [vmem:[#allocation8 + $0x174] sm:$0xf0]  ;;  %v1327_v60 = vld [vmem:[#allocation8 + $0x178] sm:$0xf0]  ;;  %s1661_s4 = smov [#allocation11]  }
 0x17a   :  { %912 = vmatpush.bf16.msra.mxu2 %v1274_v1  ;;  %951 = vmatpush.bf16.msrb.mxu0 %v1250_v26  ;;  %v1406_v1 = vld [vmem:[#allocation8 + $0xc] sm:$0xf]  ;;  %s1078_s27 = sshll.u32 %s1661_s4, 4  ;;  %s1079_s27 = int_to_ptr.vmem [resolvable:$true] %s1078_s27 }
 0x17b   :  { %394 = vadd.xlane.f32.xlu1 %v387_v16  ;;  %v1434_v16 = vld [vmem:[#allocation8 + $0xe4] sm:$0xf0]  ;;  %895 = vmatpush.bf16.msra.mxu1 %v1206_v25  ;;  %v1154_v31 = vor.u32 %v1406_v1, %v1151_v2  ;;  %v1439_v1 = vld [vmem:[#allocation8 + $0x114] sm:$0xf] }
 0x17c   :  { %v1246_v24 = vor.u32 %v1434_v16, %v1245_v15  ;;  %v1386_v16 = vor.u32 %v1463_v10, %v1383_v13  ;;  %v1440_v10 = vld [vmem:[#allocation8 + $0x11c] sm:$0xf] }
 0x17d   :  { %v1295_v13 = vld [vmem:[#allocation8 + $0x138] sm:$0xf0] }
 0x17e   :  { %913 = vmatpush.bf16.msra.mxu2 %v1242_v18  ;;  %932 = vmatpush.bf16.msra.mxu3 %v1246_v24  ;;  %v1391_v24 = vld [vmem:[#allocation8 + $0x1f8] sm:$0xf0] }
 0x17f   :  { %952 = vmatpush.bf16.msrb.mxu0 %v1218_v38  ;;  %896 = vmatpush.bf16.msra.mxu1 %v1174_v44  ;;  %v1839_v29 = vor.u32 %v1464_v23, %v1391_v24  ;;  %v1460_v38 = vld [vmem:[#allocation8 + $0x1b4] sm:$0xf0]  ;;  %v1895_v23 = vor.u32 %v1440_v10, %v1295_v13  ;;  %v1157_v13 = vld [vmem:[#allocation8 + $0x10] sm:$0xf] }
 0x180   :  { %v1358_v44 = vor.u32 %v1460_v38, %v1357_v36  ;;  %v1432_v36 = vld [vmem:[#allocation8 + $0xdc] sm:$0xf] }
 0x182   :  { %914 = vmatpush.bf16.msra.mxu2 %v1210_v33  ;;  %933 = vmatpush.bf16.msra.mxu3 %v1214_v49  ;;  %v1350_v33 = vor.u32 %v1459_v32, %v1349_v30  ;;  %v1455_v49 = vld [vmem:[#allocation8 + $0x194] sm:$0xf]  ;;  %v1261_v32 = vld [vmem:[#allocation8 + $0xd8] sm:$0xf] }
 0x183   :  { %953 = vmatpush.bf16.msrb.mxu0 %v1186_v40  ;;  %897 = vmatpush.bf16.msra.mxu1 %v1142_v59  ;;  %v1325_v40 = vld [vmem:[#allocation8 + $0x158] sm:$0xf]  ;;  %v1448_v59 = vld [vmem:[#allocation8 + $0x15c] sm:$0xf] }
 0x186   :  { %915 = vmatpush.bf16.msra.mxu2 %v1178_v51  ;;  %934 = vmatpush.bf16.msra.mxu3 %v1182_v54  ;;  %v1447_v51 = vld [vmem:[#allocation8 + $0x154] sm:$0xf] }
 0x187   :  { %954 = vmatpush.bf16.msrb.mxu0 %v1154_v31  ;;  %v1319_v54 = vld [vmem:[#allocation8 + $0x170] sm:$0xf0] }
 0x188   :  { %v1322_v57 = vor.u32 %v1447_v51, %v1319_v54  ;;  %v1423_v51 = vld [vmem:[#allocation8 + $0x94] sm:$0xf] }
 0x18a   :  { %916 = vmatpush.bf16.msra.mxu2 %v1146_v35  ;;  %v1285_v35 = vld [vmem:[#allocation8 + $0x110] sm:$0xf] }
 0x18b   :  { %1023 = vmatpush.bf16.msra.mxu0 %v1839_v29 }
 0x18e   :  { %985 = vmatpush.bf16.msrb.mxu2 %v1386_v16 }
 0x1d5   :  { %v389_v0 = vpop.xlane.xlu2 %388 }
 0x1d6   :  { %v396_v4 = vmul.f32 %v389_v0, %v1795_v61  ;;  %v1150_v0 = vor.u32 %v1410_v62, %v1149_v17  ;;  %v1326_v62 = vor.u32 %v1452_v58, %v1325_v40 }
 0x1d8   :  { %v1819_v12 = vadd.f32 1e-12, %v396_v4  ;;  %v1381_v4 = vld [vmem:[#allocation8 + $0x1d0] sm:$0xf]  ;;  %935 = vmatpush.bf16.msra.mxu3 %v1150_v0 }
 0x1d9   :  { %v1382_v8 = vor.u32 %v1467_v53, %v1381_v4  ;;  %v1443_v0 = vld [vmem:[#allocation8 + $0x12c] sm:$0xf0] }
 0x1da   :  { %1514 = vrsqrt.f32 %v1819_v12  ;;  %vm410_vm2 = vweird.f32 %v1819_v12  ;;  %v1286_v31 = vor.u32 %v1443_v0, %v1285_v35  ;;  %v1415_v0 = vld [vmem:[#allocation8 + $0x54] sm:$0xf] }
 0x1db   :  { %966 = vmatpush.bf16.msrb.mxu1 %v1382_v8  ;;  %v1444_v8 = vld [vmem:[#allocation8 + $0x134] sm:$0xf0] }
 0x1dc   :  { %1004 = vmatpush.bf16.msrb.mxu3 %v1390_v28  ;;  %v1431_v28 = vld [vmem:[#allocation8 + $0xd4] sm:$0xf] }
 0x1de   :  { %v391_v37 = vpop.xlane.xlu2 %390 }
 0x1df   :  { %v397_v39 = vmul.f32 %v391_v37, %v1795_v61  ;;  %v1354_v37 = vor.u32 %v1455_v49, %v1351_v34  ;;  %967 = vmatpush.bf16.msrb.mxu1 %v1350_v33  ;;  %v1436_v34 = vld [vmem:[#allocation8 + $0xf4] sm:$0xf0] }
 0x1e0   :  { %v1823_v43 = vpop.eup %1514  ;;  %1005 = vmatpush.bf16.msrb.mxu3 %v1358_v44 }
 0x1e1   :  { %v405_v48 = vmul.f32 %v1823_v43, %v1819_v12  ;;  %v1827_v50 = vadd.f32 1e-12, %v397_v39  ;;  %vm411_vm1 = vweird.f32 %v1823_v43  ;;  %v1456_v39 = vld [vmem:[#allocation8 + $0x19c] sm:$0xf]  ;;  %986 = vmatpush.bf16.msrb.mxu2 %v1354_v37 }
 0x1e2   :  { %vm1843_vm3 = vmor %vm410_vm2, %vm411_vm1  ;;  %v1855_v45 = vor.u32 %v1456_v39, %v1359_v41  ;;  %v1263_v37 = vld [vmem:[#allocation8 + $0xf8] sm:$0xf0]  ;;  %v1262_v39 = vor.u32 %v1436_v34, %v1261_v32 }
 0x1e3   :  { %v406_v55 = vmul.f32 %v1823_v43, %v405_v48  ;;  %1516 = vrsqrt.f32 %v1827_v50  ;;  %v1451_v48 = vld [vmem:[#allocation8 + $0x16c] sm:$0xf0]  ;;  %vm420_vm5 = vweird.f32 %v1827_v50  ;;  %v1902_v41 = vor.u32 %v1432_v36, %v1263_v37 }
 0x1e4   :  { %1024 = vmatpush.bf16.msra.mxu0 %v1855_v45  ;;  %1006 = vmatpush.bf16.msrb.mxu3 %v1326_v62 }
 0x1e5   :  { %v407_v63 = vmul.f32 0.5, %v406_v55  ;;  %987 = vmatpush.bf16.msrb.mxu2 %v1322_v57  ;;  %v1231_v57 = vld [vmem:[#allocation8 + $0xb8] sm:$0xf0] }
 0x1e6   :  { %v393_v7 = vpop.xlane.xlu0 %392 }
 0x1e7   :  { %v408_v3 = vsub.f32 1.5, %v407_v63  ;;  %v398_v18 = vmul.f32 %v393_v7, %v1795_v61  ;;  %v1868_v63 = vor.u32 %v1448_v59, %v1327_v60 }
 0x1e9   :  { %v1832_v15 = vpop.eup %1516  ;;  %v409_v26 = vmul.f32 %v1823_v43, %v408_v3  ;;  %v1847_v12 = vadd.f32 1e-12, %v398_v18  ;;  %v1293_v3 = vld [vmem:[#allocation8 + $0x118] sm:$0xf]  ;;  %1025 = vmatpush.bf16.msra.mxu0 %v1868_v63 }
 0x1ea   :  { %v415_v27 = vmul.f32 %v1832_v15, %v1827_v50  ;;  %vm421_vm4 = vweird.f32 %v1832_v15  ;;  %v1287_v50 = vld [vmem:[#allocation8 + $0x130] sm:$0xf0] }
 0x1eb   :  { %1518 = vrsqrt.f32 %v1847_v12  ;;  %v413_v22 = vsel %vm1843_vm3, %v1823_v43, %v409_v26  ;;  %v1318_v43 = vor.u32 %v1451_v48, %v1317_v47  ;;  %vm1874_vm6 = vmor %vm420_vm5, %vm421_vm4  ;;  %v1290_v7 = vor.u32 %v1439_v1, %v1287_v50  ;;  %v1253_v26 = vld [vmem:[#allocation8 + $0xd0] sm:$0xf]  ;;  %v1191_v1 = vld [vmem:[#allocation8 + $0x70] sm:$0xf0] }
 0x1ec   :  { %v416_v19 = vmul.f32 %v1832_v15, %v415_v27  ;;  %v444_v55 = vmul.f32 %v413_v22, %v1799_v5  ;;  %v1435_v27 = vld [vmem:[#allocation8 + $0xec] sm:$0xf0]  ;;  %vm430_vm8 = vweird.f32 %v1847_v12  ;;  %v1420_v50 = vld [vmem:[#allocation8 + $0x74] sm:$0xf0] }
 0x1ed   :  { %968 = vmatpush.bf16.msrb.mxu1 %v1318_v43  ;;  %988 = vmatpush.bf16.msrb.mxu2 %v1290_v7  ;;  %v1254_v30 = vor.u32 %v1435_v27, %v1253_v26  ;;  %v1221_v22 = vld [vmem:[#allocation8 + $0x90] sm:$0xf]  ;;  %v1412_v26 = vld [vmem:[#allocation8 + $0x34] sm:$0xf0]  ;;  %v1408_v27 = vld [vmem:[#allocation8 + $0x1c] sm:$0xf] }
 0x1ee   :  { %v417_v42 = vmul.f32 0.5, %v416_v19  ;;  %v395_v52 = vpop.xlane.xlu1 %394  ;;  %v452_v18 = vmul.f32 %v1860_v46, %v444_v55  ;;  %1026 = vmatpush.bf16.msra.mxu0 %v1895_v23  ;;  %v1428_v55 = vld [vmem:[#allocation8 + $0xb4] sm:$0xf0] }
 0x1ef   :  { %v399_v56 = vmul.f32 %v395_v52, %v1795_v61  ;;  %v1229_v52 = vld [vmem:[#allocation8 + $0x98] sm:$0xf] }
 0x1f0   :  { %v418_v6 = vsub.f32 1.5, %v417_v42  ;;  %v460_v19 = vadd.f32 %v1889_v11, %v452_v18  ;;  %v1427_v42 = vld [vmem:[#allocation8 + $0xac] sm:$0xf0]  ;;  %v1230_v59 = vor.u32 %v1428_v55, %v1229_v52  ;;  %v1197_v61 = vld [vmem:[#allocation8 + $0x58] sm:$0xf] }
 0x1f1   :  { %v1870_v2 = vpop.eup %1518  ;;  %v1878_v5 = vadd.f32 1e-12, %v399_v56  ;;  %969 = vmatpush.bf16.msrb.mxu1 %v1286_v31  ;;  %v1222_v48 = vor.u32 %v1427_v42, %v1221_v22  ;;  %v1424_v56 = vld [vmem:[#allocation8 + $0x9c] sm:$0xf]  ;;  %v1194_v31 = vor.u32 %v1415_v0, %v1191_v1  ;;  %v1411_v18 = vld [vmem:[#allocation8 + $0x2c] sm:$0xf0] }
 0x1f2   :  { %v419_v17 = vmul.f32 %v1832_v15, %v418_v6  ;;  %v425_v53 = vmul.f32 %v1870_v2, %v1847_v12  ;;  %vm431_vm7 = vweird.f32 %v1870_v2  ;;  %v1223_v6 = vld [vmem:[#allocation8 + $0xb0] sm:$0xf0]  ;;  %1027 = vmatpush.bf16.msra.mxu0 %v1902_v41  ;;  %v1917_v60 = vor.u32 %v1424_v56, %v1231_v57  ;;  %v1189_v12 = vld [vmem:[#allocation8 + $0x50] sm:$0xf] }
 0x1f3   :  { %1520 = vrsqrt.f32 %v1878_v5  ;;  %v1226_v40 = vor.u32 %v1423_v51, %v1223_v6  ;;  %vm1913_vm9 = vmor %vm430_vm8, %vm431_vm7  ;;  %vm440_vm11 = vweird.f32 %v1878_v5 }
 0x1f4   :  { %v423_v4 = vsel %vm1874_vm6, %v1832_v15, %v419_v17  ;;  %v1294_v15 = vor.u32 %v1444_v8, %v1293_v3  ;;  %v426_v21 = vmul.f32 %v1870_v2, %v425_v53  ;;  %v1419_v17 = vld [vmem:[#allocation8 + $0x6c] sm:$0xf0]  ;;  %v1416_v3 = vld [vmem:[#allocation8 + $0x5c] sm:$0xf]  ;;  %v1198_v8 = vor.u32 %v1420_v50, %v1197_v61 }
 0x1f5   :  { %v445_v16 = vmul.f32 %v423_v4, %v1804_v9  ;;  %v1255_v9 = vld [vmem:[#allocation8 + $0xf0] sm:$0xf0]  ;;  %970 = vmatpush.bf16.msrb.mxu1 %v1254_v30  ;;  %v1190_v35 = vor.u32 %v1419_v17, %v1189_v12  ;;  %v1199_v4 = vld [vmem:[#allocation8 + $0x78] sm:$0xf0] }
 0x1f6   :  { %v427_v25 = vmul.f32 0.5, %v426_v21  ;;  %1007 = vmatpush.bf16.msrb.mxu3 %v1294_v15  ;;  %v1258_v49 = vor.u32 %v1431_v28, %v1255_v9  ;;  %1028 = vmatpush.bf16.msra.mxu0 %v1917_v60  ;;  %v1202_v10 = vor.u32 %v1416_v3, %v1199_v4  ;;  %v1159_v15 = vld [vmem:[#allocation8 + $0x30] sm:$0xf0]  ;;  %v1165_v21 = vld [vmem:[#allocation8 + $0x18] sm:$0xf]  ;;  %v1158_v9 = vor.u32 %v1411_v18, %v1157_v13 }
 0x1f7   :  { %v453_v24 = vmul.f32 %v1860_v46, %v445_v16  ;;  %v1407_v16 = vld [vmem:[#allocation8 + $0x14] sm:$0xf] }
 0x1f8   :  { %v428_v38 = vsub.f32 1.5, %v427_v25  ;;  %989 = vmatpush.bf16.msrb.mxu2 %v1258_v49  ;;  %v1162_v32 = vor.u32 %v1407_v16, %v1159_v15 }
 0x1f9   :  { %v461_v33 = vadd.f32 %v1889_v11, %v453_v24  ;;  %v1904_v44 = vpop.eup %1520  ;;  %971 = vmatpush.bf16.msrb.mxu1 %v1222_v48 }
 0x1fa   :  { %v429_v43 = vmul.f32 %v1870_v2, %v428_v38  ;;  %v435_v54 = vmul.f32 %v1904_v44, %v1878_v5  ;;  %1008 = vmatpush.bf16.msrb.mxu3 %v1262_v39  ;;  %vm441_vm10 = vweird.f32 %v1904_v44  ;;  %1029 = vmatpush.bf16.msra.mxu0 %v1202_v10 }
 0x1fb   :  { %v1472_v47 = vpack.c.bf16 %v461_v33, %v460_v19  ;;  %vm442_vm12 = vmor %vm440_vm11, %vm441_vm10  ;;  %v1166_v19 = vor.u32 %v1412_v26, %v1165_v21 }
 0x1fc   :  { %v436_v62 = vmul.f32 %v1904_v44, %v435_v54  ;;  %990 = vmatpush.bf16.msrb.mxu2 %v1226_v40  ;;  %v433_v53 = vsel %vm1913_vm9, %v1870_v2, %v429_v43  ;;  %v1167_v2 = vld [vmem:[#allocation8 + $0x38] sm:$0xf0] }
 0x1fd   :  { %1473 = vst [vmem:[#allocation2] sm:$0xff] %v1472_v47   ;;  %972 = vmatpush.bf16.msrb.mxu1 %v1190_v35  ;;  %v446_v28 = vmul.f32 %v433_v53, %v1809_v14  ;;  %v1170_v33 = vor.u32 %v1408_v27, %v1167_v2 }
 0x1fe   :  { %v437_v7 = vmul.f32 0.5, %v436_v62  ;;  %1009 = vmatpush.bf16.msrb.mxu3 %v1230_v59 }
 0x1ff   :  { %v454_v14 = vmul.f32 %v1860_v46, %v446_v28  ;;  %1030 = vmatpush.bf16.msra.mxu0 %v1170_v33 }
 0x200   :  { %v438_v24 = vsub.f32 1.5, %v437_v7  ;;  %991 = vmatpush.bf16.msrb.mxu2 %v1194_v31 }
 0x201   :  { %973 = vmatpush.bf16.msrb.mxu1 %v1158_v9  ;;  %v462_v36 = vadd.f32 %v1889_v11, %v454_v14 }
 0x202   :  { %v439_v25 = vmul.f32 %v1904_v44, %v438_v24  ;;  %1010 = vmatpush.bf16.msrb.mxu3 %v1198_v8 }
 0x204   :  { %v1403_v30 = vld [vmem:[#allocation2] sm:$0xff]  ;;  %v443_v49 = vsel %vm442_vm12, %v1904_v44, %v439_v25  ;;  %992 = vmatpush.bf16.msrb.mxu2 %v1162_v32 }
 0x205   :  { %898 = vmatmul.bf16.vlgmr.msra.gmra.mxu1 %v1403_v30  ;;  %917 = vmatmul.bf16.vlgmr.msra.gmra.mxu2 %v1403_v30  ;;  %v447_v34 = vmul.f32 %v443_v49, %v1814_v20 }
 0x206   :  { %936 = vmatmul.bf16.vlgmr.msra.gmra.mxu3 %v1403_v30  ;;  %955 = vmatmul.bf16.vlgmr.msrb.gmra.mxu0 %v1403_v30 }
 0x207   :  { %v455_v5 = vmul.f32 %v1860_v46, %v447_v34  ;;  %1011 = vmatpush.bf16.msrb.mxu3 %v1166_v19  ;;  %1480 = vmatpush.bf16.msra.mxu1 %v1839_v29  ;;  %v540_v29 = vld [vmem:[#allocation9] sm:$0xff] }
 0x208   :  { %v545_v46 = vperm.slane %v540_v29, 3  ;;  %v544_v22 = vperm.slane %v540_v29, 2  ;;  %v546_v50 = vperm.slane %v540_v29, 4  ;;  %v549_v4 = vperm.slane %v540_v29, 7 }
 0x209   :  { %v463_v37 = vadd.f32 %v1889_v11, %v455_v5  ;;  %v547_v15 = vperm.slane %v540_v29, 5  ;;  %v548_v21 = vperm.slane %v540_v29, 6 }
 0x20b   :  { %v1477_v38 = vpack.c.bf16 %v463_v37, %v462_v36  ;;  %1481 = vmatpush.bf16.msra.mxu1 %v1855_v45  ;;  %v542_v45 = vperm.slane %v540_v29, 0 }
 0x20d   :  { %1479 = vst [vmem:[#allocation2 + $0x8] sm:$0xff] %v1477_v38  }
 0x20f   :  { %1482 = vmatpush.bf16.msra.mxu1 %v1868_v63 }
 0x213   :  { %1483 = vmatpush.bf16.msra.mxu1 %v1895_v23 }
 0x214   :  { %v1404_v20 = vld [vmem:[#allocation2 + $0x8] sm:$0xff] }
 0x215   :  { %903 = vmatmul.bf16.gmra.mxu1 %v1404_v20  ;;  %922 = vmatmul.bf16.gmra.mxu2 %v1404_v20 }
 0x216   :  { %941 = vmatmul.bf16.gmra.mxu3 %v1404_v20  ;;  %960 = vmatmul.bf16.gmra.mxu0 %v1404_v20 }
 0x217   :  { %1484 = vmatpush.bf16.msra.mxu1 %v1902_v41  ;;  %v543_v41 = vperm.slane %v540_v29, 1 }
 0x21b   :  { %1485 = vmatpush.bf16.msra.mxu1 %v1917_v60 }
 0x21f   :  { %1486 = vmatpush.bf16.msra.mxu1 %v1202_v10 }
 0x223   :  { %1487 = vmatpush.bf16.msra.mxu1 %v1170_v33 }
 0x225   :  { %974 = vmatmul.bf16.vlgmr.msrb.gmra.mxu1 %v1403_v30  ;;  %993 = vmatmul.bf16.vlgmr.msrb.gmra.mxu2 %v1403_v30 }
 0x226   :  { %1012 = vmatmul.bf16.vlgmr.msrb.gmra.mxu3 %v1403_v30  ;;  %1031 = vmatmul.bf16.vlgmr.msra.gmra.mxu0 %v1403_v30 }
 0x235   :  { %979 = vmatmul.bf16.gmra.mxu1 %v1404_v20  ;;  %998 = vmatmul.bf16.gmra.mxu2 %v1404_v20 }
 0x236   :  { %1017 = vmatmul.bf16.gmra.mxu3 %v1404_v20 }
 0x245   :  { %1036 = vmatmul.bf16.vlgmr.msra.gmra.mxu1 %v1404_v20 }
 0x282   :  { %v899_v63 = vpop.f32.mrf.mxu1 }
 0x283   :  { %v900_v11 = vadd.f32 %v899_v63, %v542_v45  ;;  %v956_v23 = vpop.f32.mrf.mxu0 }
 0x284   :  { %v957_v39 = vadd.f32 %v956_v23, %v545_v46 }
 0x285   :  { %1042 = vst [vmem:[#allocation11] sm:$0xff] %v900_v11 }
 0x286   :  { %1045 = vst [vmem:[#allocation11 + $0x18] sm:$0xff] %v957_v39 }
 0x288   :  { %v918_v42 = vpop.f32.mrf.mxu2 }
 0x289   :  { %v919_v44 = vadd.f32 %v918_v42, %v543_v41  ;;  %v937_v47 = vpop.f32.mrf.mxu3 }
 0x28a   :  { %v938_v48 = vadd.f32 %v937_v47, %v544_v22  ;;  %v901_v51 = vpop.f32.mrf.mxu1 }
 0x28b   :  { %1043 = vst [vmem:[#allocation11 + $0x8] sm:$0xff] %v919_v44  ;;  %v902_v6 = vadd.f32 %v901_v51, %v542_v45  ;;  %v958_v52 = vpop.f32.mrf.mxu0 }
 0x28c   :  { %1044 = vst [vmem:[#allocation11 + $0x10] sm:$0xff] %v938_v48  ;;  %v959_v43 = vadd.f32 %v958_v52, %v545_v46 }
 0x28d   :  { %1050 = vst [vmem:[#allocation11 + $0x40] sm:$0xff] %v902_v6 }
 0x28e   :  { %1053 = vst [vmem:[#allocation11 + $0x58] sm:$0xff] %v959_v43 }
 0x290   :  { %v920_v54 = vpop.f32.mrf.mxu2 }
 0x291   :  { %v921_v40 = vadd.f32 %v920_v54, %v543_v41  ;;  %v939_v55 = vpop.f32.mrf.mxu3 }
 0x292   :  { %v940_v56 = vadd.f32 %v939_v55, %v544_v22  ;;  %v904_v57 = vpop.f32.mrf.mxu1 }
 0x293   :  { %1051 = vst [vmem:[#allocation11 + $0x48] sm:$0xff] %v921_v40  ;;  %v905_v58 = vadd.f32 %v904_v57, %v542_v45  ;;  %v961_v59 = vpop.f32.mrf.mxu0 }
 0x294   :  { %1052 = vst [vmem:[#allocation11 + $0x50] sm:$0xff] %v940_v56  ;;  %v962_v60 = vadd.f32 %v961_v59, %v545_v46 }
 0x295   :  { %1058 = vst [vmem:[#allocation11 + $0x80] sm:$0xff] %v905_v58 }
 0x296   :  { %1061 = vst [vmem:[#allocation11 + $0x98] sm:$0xff] %v962_v60 }
 0x298   :  { %v923_v12 = vpop.f32.mrf.mxu2 }
 0x299   :  { %v924_v17 = vadd.f32 %v923_v12, %v543_v41  ;;  %v942_v62 = vpop.f32.mrf.mxu3 }
 0x29a   :  { %v943_v35 = vadd.f32 %v942_v62, %v544_v22  ;;  %v906_v0 = vpop.f32.mrf.mxu1 }
 0x29b   :  { %1059 = vst [vmem:[#allocation11 + $0x88] sm:$0xff] %v924_v17  ;;  %v907_v1 = vadd.f32 %v906_v0, %v542_v45  ;;  %v963_v61 = vpop.f32.mrf.mxu0 }
 0x29c   :  { %1060 = vst [vmem:[#allocation11 + $0x90] sm:$0xff] %v943_v35  ;;  %v964_v31 = vadd.f32 %v963_v61, %v545_v46 }
 0x29d   :  { %1066 = vst [vmem:[#allocation11 + $0xc0] sm:$0xff] %v907_v1 }
 0x29e   :  { %1069 = vst [vmem:[#allocation11 + $0xd8] sm:$0xff] %v964_v31 }
 0x2a0   :  { %v925_v3 = vpop.f32.mrf.mxu2 }
 0x2a1   :  { %v926_v53 = vadd.f32 %v925_v3, %v543_v41  ;;  %v944_v7 = vpop.f32.mrf.mxu3 }
 0x2a2   :  { %v945_v8 = vadd.f32 %v944_v7, %v544_v22  ;;  %v975_v10 = vpop.f32.mrf.mxu1 }
 0x2a3   :  { %1067 = vst [vmem:[#allocation11 + $0xc8] sm:$0xff] %v926_v53  ;;  %v976_v13 = vadd.f32 %v975_v10, %v546_v50  ;;  %v1032_v18 = vpop.f32.mrf.mxu0 }
 0x2a4   :  { %1068 = vst [vmem:[#allocation11 + $0xd0] sm:$0xff] %v945_v8  ;;  %v1033_v16 = vadd.f32 %v1032_v18, %v549_v4 }
 0x2a5   :  { %1046 = vst [vmem:[#allocation11 + $0x20] sm:$0xff] %v976_v13 }
 0x2a6   :  { %1049 = vst [vmem:[#allocation11 + $0x38] sm:$0xff] %v1033_v16 }
 0x2a8   :  { %v994_v24 = vpop.f32.mrf.mxu2 }
 0x2a9   :  { %v995_v26 = vadd.f32 %v994_v24, %v547_v15  ;;  %v1013_v27 = vpop.f32.mrf.mxu3 }
 0x2aa   :  { %v1014_v28 = vadd.f32 %v1013_v27, %v548_v21  ;;  %v977_v2 = vpop.f32.mrf.mxu1 }
 0x2ab   :  { %1047 = vst [vmem:[#allocation11 + $0x28] sm:$0xff] %v995_v26  ;;  %v978_v25 = vadd.f32 %v977_v2, %v546_v50  ;;  %v1034_v30 = vpop.f32.mrf.mxu0 }
 0x2ac   :  { %1048 = vst [vmem:[#allocation11 + $0x30] sm:$0xff] %v1014_v28  ;;  %v1035_v9 = vadd.f32 %v1034_v30, %v549_v4 }
 0x2ad   :  { %1054 = vst [vmem:[#allocation11 + $0x60] sm:$0xff] %v978_v25 }
 0x2ae   :  { %1057 = vst [vmem:[#allocation11 + $0x78] sm:$0xff] %v1035_v9 }
 0x2b0   :  { %v996_v32 = vpop.f32.mrf.mxu2 }
 0x2b1   :  { %v997_v19 = vadd.f32 %v996_v32, %v547_v15  ;;  %v1015_v33 = vpop.f32.mrf.mxu3 }
 0x2b2   :  { %v1016_v49 = vadd.f32 %v1015_v33, %v548_v21  ;;  %v980_v14 = vpop.f32.mrf.mxu1 }
 0x2b3   :  { %1055 = vst [vmem:[#allocation11 + $0x68] sm:$0xff] %v997_v19  ;;  %v981_v34 = vadd.f32 %v980_v14, %v546_v50 }
 0x2b4   :  { %1056 = vst [vmem:[#allocation11 + $0x70] sm:$0xff] %v1016_v49 }
 0x2b5   :  { %1062 = vst [vmem:[#allocation11 + $0xa0] sm:$0xff] %v981_v34 }
 0x2b8   :  { %v999_v5 = vpop.f32.mrf.mxu2 }
 0x2b9   :  { %v1000_v36 = vadd.f32 %v999_v5, %v547_v15  ;;  %v1018_v37 = vpop.f32.mrf.mxu3 }
 0x2ba   :  { %v1019_v38 = vadd.f32 %v1018_v37, %v548_v21  ;;  %v982_v20 = vpop.f32.mrf.mxu1 }
 0x2bb   :  { %1063 = vst [vmem:[#allocation11 + $0xa8] sm:$0xff] %v1000_v36  ;;  %v983_v29 = vadd.f32 %v982_v20, %v546_v50 }
 0x2bc   :  { %1064 = vst [vmem:[#allocation11 + $0xb0] sm:$0xff] %v1019_v38 }
 0x2bd   :  { %1070 = vst [vmem:[#allocation11 + $0xe0] sm:$0xff] %v983_v29 }
 0x2c0   :  { %v1001_v45 = vpop.f32.mrf.mxu2 }
 0x2c1   :  { %v1002_v46 = vadd.f32 %v1001_v45, %v547_v15  ;;  %v1020_v63 = vpop.f32.mrf.mxu3 }
 0x2c2   :  { %v1021_v11 = vadd.f32 %v1020_v63, %v548_v21  ;;  %v1037_v23 = vpop.f32.mrf.mxu1 }
 0x2c3   :  { %1071 = vst [vmem:[#allocation11 + $0xe8] sm:$0xff] %v1002_v46  ;;  %v1038_v39 = vadd.f32 %v1037_v23, %v549_v4 }
 0x2c4   :  { %1072 = vst [vmem:[#allocation11 + $0xf0] sm:$0xff] %v1021_v11 }
 0x2c5   :  { %1065 = vst [vmem:[#allocation11 + $0xb8] sm:$0xff] %v1038_v39 }
 0x2ca   :  { %v1039_v41 = vpop.f32.mrf.mxu1 }
 0x2cb   :  { %v1040_v22 = vadd.f32 %v1039_v41, %v549_v4 }
 0x2cd   :  { %1073 = vst [vmem:[#allocation11 + $0xf8] sm:$0xff] %v1040_v22 }
 0x2ce   :  { %1086 = dma.vmem_to_hbm [thread:$0]  %s1079_s27, 4096, %s1081_s30, [#allocation5], %s1662_s8, %s1662_s8, %s1651_s9  }
 0x2cf   :  { %1648 = dma.done.wait [#allocation5], 4096  }
 0x2d0   :  { %1649 = vsyncadd [#allocation5], 4294963200 }
 0x2d1   :  { %1091 = vsyncpa [#allocation4], 1 }
 0x2d2   :  { %1092 = vsyncpa [#allocation7], 1 }
 0x2d3   :  { %1093 = vsyncpa [#allocation10], 1 }
 0x2d4   :  { %1094 = vsyncpa [#allocation5], 1 }

</bundles_post_ra>
